<compile_context>
chip_gen: v7x
topology: tpu7x:2x2x1
jax: 0.10.0
libtpu: 0.0.40
codegen_flags: <defaults>
</compile_context>

<pallas_src>
import numpy as np
import jax
import jax.numpy as jnp
from jax.experimental import pallas as pl
from jax.experimental.pallas import tpu as pltpu


def _spatial_softmax3d_kernel(f_ref, pos_ref, out_ref, acc_ref):
    # f_ref:   (TM, TK)  flattened feature rows (one row per (n, c))
    # pos_ref: (TK, 4)   columns = [pos_x, pos_y, pos_z, ones]
    # out_ref: (TM, 4)   raw sums [sum(px*f), sum(py*f), sum(pz*f), sum(f)]
    # acc_ref: (TM, 4)   f32 accumulator, resident across the K grid axis
    k = pl.program_id(1)

    @pl.when(k == 0)
    def _init():
        acc_ref[...] = jnp.zeros_like(acc_ref)

    acc_ref[...] += jnp.dot(
        f_ref[...],
        pos_ref[...],
        precision=jax.lax.Precision.HIGHEST,   # f32 parity with the torch reference
        preferred_element_type=jnp.float32,
    )

    @pl.when(k == pl.num_programs(1) - 1)
    def _finalize():
        out_ref[...] = acc_ref[...]


def make_positions(height, width, depth, lim=(0.0, 1.0, 0.0, 1.0, 0.0, 1.0)):
    """Replicates the buffer construction in SpatialSoftmax3D.__init__."""
    pos_y, pos_x, pos_z = np.meshgrid(
        np.linspace(lim[0], lim[1], width),
        np.linspace(lim[2], lim[3], height),
        np.linspace(lim[4], lim[5], depth),
    )
    L = height * width * depth
    pos_x = pos_x.reshape(L).astype(np.float32)
    pos_y = pos_y.reshape(L).astype(np.float32)
    pos_z = pos_z.reshape(L).astype(np.float32)
    return jnp.asarray(pos_x), jnp.asarray(pos_y), jnp.asarray(pos_z)


def _vmem_capacity_bytes():
    try:
        cap = getattr(pltpu.get_tpu_info(), "vmem_capacity_bytes", None)
        if cap:
            return int(cap)
    except Exception:
        pass
    return 64 * 1024 * 1024  # conservative default: v7x per-TensorCore VMEM


def _choose_tiles(M, L, tk_max):
    """Pick (TM, TK) per chip generation. TK exactly divides L so ragged-block
    garbage never enters the reduction; TM is sized against VMEM and capped so
    the parallel row axis has >= 2 steps (dual-TC v7x)."""
    if L <= tk_max or L % 128 != 0:
        tk = L
    else:
        tk = 128
        for d in range(tk_max // 128, 0, -1):
            if L % (d * 128) == 0:
                tk = d * 128
                break

    vmem_cap = _vmem_capacity_bytes()
    budget = vmem_cap // 2                      # headroom for compiler scratch etc.
    # dominant VMEM user: double-buffered (TM, TK) f32 feature tile
    tm_vmem = max(8, (budget // (2 * tk * 4)) // 8 * 8)
    # keep >= 2 steps on the "parallel" row axis whenever M allows it
    tm_split = max(8, (((M + 1) // 2) + 7) // 8 * 8) if M > 8 else 8
    tm = max(8, min(tm_vmem, tm_split))
    return tm, tk, vmem_cap


def spatial_softmax3d(feature, pos_x, pos_y, pos_z, *, tk_max=8192):
    """feature: (N, C, H, W, D) float32 (NCHWD). Returns (keypoints, heatmap)."""
    # TODO(synk): the 'NHWDC' data_format branch of the source module (which
    # contains a typo'd `.tranpose`) is not implemented; NCHWD only.
    N, C, H, W, D = feature.shape
    L = H * W * D
    M = N * C

    feature = feature.astype(jnp.float32)
    f_flat = feature.reshape(M, L)              # no pad copy
    ones = jnp.ones((L,), jnp.float32)
    pos4 = jnp.stack([pos_x.astype(jnp.float32),
                      pos_y.astype(jnp.float32),
                      pos_z.astype(jnp.float32),
                      ones], axis=1)            # (L, 4)

    TM, TK, vmem_cap = _choose_tiles(M, L, tk_max)
    grid = (pl.cdiv(M, TM), L // TK)

    # per-step VMEM footprint (double-buffered feature tile dominates)
    approx_bytes = 2 * TM * TK * 4 + 2 * TK * 4 * 4 + 3 * TM * 128 * 4
    vmem_limit = int(min(max(approx_bytes * 5 // 4 + (2 << 20), 32 << 20),
                         vmem_cap * 7 // 8))

    sums = pl.pallas_call(
        _spatial_softmax3d_kernel,
        out_shape=jax.ShapeDtypeStruct((M, 4), jnp.float32),
        grid_spec=pltpu.PrefetchScalarGridSpec(
            num_scalar_prefetch=0,
            grid=grid,
            in_specs=[
                pl.BlockSpec((TM, TK), lambda i, k: (i, k)),
                pl.BlockSpec((TK, 4), lambda i, k: (k, 0)),
            ],
            out_specs=pl.BlockSpec((TM, 4), lambda i, k: (i, 0)),
            scratch_shapes=[pltpu.VMEM((TM, 4), jnp.float32)],
        ),
        compiler_params=pltpu.CompilerParams(
            dimension_semantics=("parallel", "arbitrary"),
            vmem_limit_bytes=vmem_limit,
        ),
        cost_estimate=pl.CostEstimate(
            flops=8 * M * L,                    # (M,L)@(L,4) MACs x 2
            transcendentals=0,
            bytes_accessed=4 * M * L + 16 * L + 16 * M,
        ),
    )(f_flat, pos4)

    eps = 1e-6
    denom = sums[:, 3:4] + eps
    feature_keypoints = (sums[:, 0:3] / denom).reshape(N, C, 3)
    # heatmap is just the (un-softmaxed) input reshaped back — no compute.
    heatmap = feature.reshape(N, C, H, W, D)
    return feature_keypoints, heatmap


def _reference(feature, pos_x, pos_y, pos_z):
    """Pure-JAX replica of the PyTorch forward for verification."""
    N, C, H, W, D = feature.shape
    L = H * W * D
    f = feature.reshape(-1, L).astype(jnp.float32)
    eps = 1e-6
    denom = jnp.sum(f, axis=1, keepdims=True) + eps
    ex = jnp.sum(pos_x * f, axis=1, keepdims=True) / denom
    ey = jnp.sum(pos_y * f, axis=1, keepdims=True) / denom
    ez = jnp.sum(pos_z * f, axis=1, keepdims=True) / denom
    kp = jnp.concatenate([ex, ey, ez], axis=1).reshape(-1, C, 3)
    return kp, f.reshape(-1, C, H, W, D)


def _check(feature, pos_x, pos_y, pos_z, **kwargs):
    kp, hm = spatial_softmax3d(feature, pos_x, pos_y, pos_z, **kwargs)
    kp = jax.block_until_ready(kp)
    hm = jax.block_until_ready(hm)
    ref_kp, ref_hm = _reference(feature, pos_x, pos_y, pos_z)
    np.testing.assert_allclose(np.asarray(kp), np.asarray(ref_kp),
                               rtol=1e-5, atol=1e-5)
    np.testing.assert_allclose(np.asarray(hm), np.asarray(ref_hm),
                               rtol=0, atol=0)
    return kp, hm


if __name__ == "__main__":
    key = jax.random.PRNGKey(0)
    k1, k2 = jax.random.split(key)

    # Small shapes consistent with the module: H=W=D=8 -> L=512.
    H, W, D = 8, 8, 8
    pos_x, pos_y, pos_z = make_positions(H, W, D)

    # Config 1: N=2, C=16 -> M=32 rows, TM=16 (2 parallel row steps), 1 K step.
    N, C = 2, 16
    x = jax.random.uniform(k1, (N, C, H, W, D), dtype=jnp.float32)
    kp, hm = _check(x, pos_x, pos_y, pos_z)
    assert kp.shape == (N, C, 3)
    assert hm.shape == (N, C, H, W, D)

    # Config 2: force the K-reduction path (TK=128 -> 4 K steps) plus a ragged
    # last row tile (M=10, TM=8) to exercise init/finalize and masked writeback.
    N2, C2 = 2, 5
    x2 = jax.random.uniform(k2, (N2, C2, H, W, D), dtype=jnp.float32)
    kp2, hm2 = _check(x2, pos_x, pos_y, pos_z, tk_max=128)
    assert kp2.shape == (N2, C2, 3)
    assert hm2.shape == (N2, C2, H, W, D)

    print("KERNEL_OK")
</pallas_src>

<mosaic_0001>
module attributes {stable_mosaic.version = 11 : i64} {
  func.func @_spatial_softmax3d_kernel(%arg0: i32, %arg1: i32, %arg2: memref<16x512xf32, #tpu.memory_space<vmem>>, %arg3: memref<512x4xf32, #tpu.memory_space<vmem>>, %arg4: memref<16x4xf32, #tpu.memory_space<vmem>>, %arg5: memref<16x4xf32, #tpu.memory_space<vmem>>) attributes {dimension_semantics = [#tpu.dimension_semantics<parallel>, #tpu.dimension_semantics<arbitrary>], iteration_bounds = array<i64: 2, 1>, scalar_prefetch = 0 : i64, scratch_operands = 1 : i64, tpu.core_type = #tpu.core_type<tc>, window_params = [{transform_indices = @transform_0, window_bounds = array<i64: 16, 512>}, {transform_indices = @transform_1, window_bounds = array<i64: 512, 4>}, {transform_indices = @transform_2, window_bounds = array<i64: 16, 4>}]} {
    %c0_i32 = arith.constant 0 : i32
    %0 = arith.cmpi eq, %arg1, %c0_i32 : i32
    %1 = arith.extui %0 : i1 to i32
    %c0_i32_0 = arith.constant 0 : i32
    %2 = arith.cmpi ne, %1, %c0_i32_0 : i32
    scf.if %2 {
      %cst_10 = arith.constant 0.000000e+00 : f32
      %12 = vector.broadcast %cst_10 : f32 to vector<16x4xf32>
      %c0_11 = arith.constant 0 : index
      %c0_12 = arith.constant 0 : index
      %13 = vector.load %arg5[%c0_11, %c0_12] : memref<16x4xf32, #tpu.memory_space<vmem>>, vector<16x4xf32>
      tpu.vector_store %arg5[%c0_11, %c0_12], %12 {strides = array<i32>} : memref<16x4xf32, #tpu.memory_space<vmem>>, vector<16x4xf32>,
    } else {
    }
    %c0 = arith.constant 0 : index
    %c0_1 = arith.constant 0 : index
    %3 = vector.load %arg5[%c0, %c0_1] : memref<16x4xf32, #tpu.memory_space<vmem>>, vector<16x4xf32>
    %c0_2 = arith.constant 0 : index
    %c0_3 = arith.constant 0 : index
    %4 = vector.load %arg2[%c0_2, %c0_3] : memref<16x512xf32, #tpu.memory_space<vmem>>, vector<16x512xf32>
    %c0_4 = arith.constant 0 : index
    %c0_5 = arith.constant 0 : index
    %5 = vector.load %arg3[%c0_4, %c0_5] : memref<512x4xf32, #tpu.memory_space<vmem>>, vector<512x4xf32>
    %cst = arith.constant dense<0.000000e+00> : vector<16x4xf32>
    %6 = tpu.matmul %4, %5, %cst {dimension_numbers = #tpu.dot_dimension_numbers<[1], [0], [0], [1], [0, 0, 1, 1], [], []>, precision = #tpu.contract_precision<fp32>} : vector<16x512xf32>, vector<512x4xf32>, vector<16x4xf32> -> vector<16x4xf32>
    %7 = arith.addf %3, %6 : vector<16x4xf32>
    %c0_6 = arith.constant 0 : index
    %c0_7 = arith.constant 0 : index
    %8 = vector.load %arg5[%c0_6, %c0_7] : memref<16x4xf32, #tpu.memory_space<vmem>>, vector<16x4xf32>
    tpu.vector_store %arg5[%c0_6, %c0_7], %7 {strides = array<i32>} : memref<16x4xf32, #tpu.memory_space<vmem>>, vector<16x4xf32>,
    %c0_i32_8 = arith.constant 0 : i32
    %9 = arith.cmpi eq, %arg1, %c0_i32_8 : i32
    %10 = arith.extui %9 : i1 to i32
    %c0_i32_9 = arith.constant 0 : i32
    %11 = arith.cmpi ne, %10, %c0_i32_9 : i32
    scf.if %11 {
      %c0_10 = arith.constant 0 : index
      %c0_11 = arith.constant 0 : index
      %12 = vector.load %arg5[%c0_10, %c0_11] : memref<16x4xf32, #tpu.memory_space<vmem>>, vector<16x4xf32>
      %c0_12 = arith.constant 0 : index
      %c0_13 = arith.constant 0 : index
      %13 = vector.load %arg4[%c0_12, %c0_13] : memref<16x4xf32, #tpu.memory_space<vmem>>, vector<16x4xf32>
      tpu.vector_store %arg4[%c0_12, %c0_13], %12 {strides = array<i32>} : memref<16x4xf32, #tpu.memory_space<vmem>>, vector<16x4xf32>,
    } else {
    }
    return
  }
  func.func @transform_0(%arg0: i32, %arg1: i32) -> (i32, i32) {
    %c0_i32 = arith.constant 0 : i32
    return %arg0, %arg1 : i32, i32
  }
  func.func @transform_1(%arg0: i32, %arg1: i32) -> (i32, i32) {
    %c0_i32 = arith.constant 0 : i32
    %c0_i32_0 = arith.constant 0 : i32
    return %arg1, %c0_i32 : i32, i32
  }
  func.func @transform_2(%arg0: i32, %arg1: i32) -> (i32, i32) {
    %c0_i32 = arith.constant 0 : i32
    %c0_i32_0 = arith.constant 0 : i32
    return %arg0, %c0_i32 : i32, i32
  }
}

</mosaic_0001>

<bundles_post_ra>
// kernel: tpu_custom_call.1
= control target key start
LH: loop header
LB: loop body
LE: loop exit
PB: predicated region body
PF: predicated region fallthrough
CT: control target
= control target key end

     0   :  { %s3134_s9 = smov 0   ;;  %s3136_s10 = smov 0   ;;  %s4335_s0 = inlined_call_operand.vmem [shape: f32[32,512], index: 0, kind: input, shape index: {}]   ;;  %s4336_s1 = inlined_call_operand.vmem [shape: f32[512,4], index: 1, kind: input, shape index: {}]   ;;  %s4337_s2 = inlined_call_operand.vmem [shape: f32[32,4], index: 2, kind: output, shape index: {}]  }
   0x1   :  { %s3138_s11 = smov 0  }
   0x2 LB: > { %s24_s12 = sadd.s32 1, %s3112_s10  ;;  %p2220_p0 = scmp.ge.s32.totalorder %s3116_s11, 1  ;;  %s3116_s11 = sphi %s3138_s11, %s12_s11   ;;  %s3112_s10 = sphi %s3136_s10, %s4572_s10   ;;  %s3108_s9 = sphi %s3134_s9, %s4571_s9  }
   0x3   : > { %p26_p1 = scmp.ge.s32.totalorder %s24_s12, 2  ;;  %p144_p2 = scmp.lt.s32.totalorder %s3116_s11, 3 }
   0x5   : > { %s4574_s12 = smov (%p26_p1, %s24_s12), 0  ;;  %p145_p3 = pnand %p2220_p0, %p144_p2 }
   0x7   : > { %148 = sbr.rel (%p145_p3) target bundleno = 467 (0x1d3), region = 28 }
   0xe   : > { %v233_v0 = vld [vmem:[%s4336_s1 + $0x80] sm:$0xff]  ;;  %v234_v1 = vld [vmem:[%s4336_s1 + $0x88] sm:$0xff]  ;;  %v235_v7 = vld [vmem:[%s4336_s1 + $0x90] sm:$0xff]  ;;  %s2221_s7 = sshll.u32 %s3108_s9, 1  ;;  %vm204_vm0 = vcmask 31744  }
   0xf   : > { %v217_v2 = vld [vmem:[%s4336_s1] sm:$0xff]  ;;  %v330_v3 = vand.u32 4294901760, %v233_v0  ;;  %v333_v4 = vand.u32 4294901760, %v234_v1  ;;  %v218_v5 = vld [vmem:[%s4336_s1 + $0x8] sm:$0xff]  ;;  %v236_v8 = vld [vmem:[%s4336_s1 + $0x98] sm:$0xff]  ;;  %v336_v10 = vand.u32 4294901760, %v235_v7 }
  0x10   : > { %v282_v6 = vand.u32 4294901760, %v217_v2  ;;  %v285_v9 = vand.u32 4294901760, %v218_v5  ;;  %v339_v11 = vand.u32 4294901760, %v236_v8  ;;  %v219_v12 = vld [vmem:[%s4336_s1 + $0x10] sm:$0xff]  ;;  %v220_v13 = vld [vmem:[%s4336_s1 + $0x18] sm:$0xff]  ;;  %v237_v18 = vld [vmem:[%s4336_s1 + $0xa0] sm:$0xff] }
  0x11   : > { %v3178_v14 = vpack.c.bf16 %v333_v4, %v330_v3  ;;  %v288_v16 = vand.u32 4294901760, %v219_v12  ;;  %v291_v17 = vand.u32 4294901760, %v220_v13  ;;  %v238_v19 = vld [vmem:[%s4336_s1 + $0xa8] sm:$0xff]  ;;  %v221_v23 = vld [vmem:[%s4336_s1 + $0x20] sm:$0xff]  ;;  %v3201_v25 = vsub.f32 %v235_v7, %v336_v10  ;;  %v239_v37 = vld [vmem:[%s4336_s1 + $0xb0] sm:$0xff]  ;;  %p3347_p4 = scmp.lt.s32.totalorder %s2221_s7, 3 }
  0x12   : > { %v3180_v15 = vsub.f32 %v217_v2, %v282_v6  ;;  %v3188_v20 = vpack.c.bf16 %v285_v9, %v282_v6  ;;  %v3190_v21 = vsub.f32 %v218_v5, %v285_v9  ;;  %v3192_v22 = vpack.c.bf16 %v339_v11, %v336_v10  ;;  %v222_v24 = vld [vmem:[%s4336_s1 + $0x28] sm:$0xff]  ;;  %v240_v42 = vld [vmem:[%s4336_s1 + $0xb8] sm:$0xff]  ;;  %v223_v55 = vld [vmem:[%s4336_s1 + $0x30] sm:$0xff] }
  0x13   : > { %2686 = vmatprep.subr.bf16.mxu0 %v3178_v14  ;;  %v3203_v26 = vsub.f32 %v236_v8, %v339_v11  ;;  %v3205_v27 = vpack.c.bf16 %v291_v17, %v288_v16  ;;  %v3207_v28 = vsub.f32 %v219_v12, %v288_v16  ;;  %v342_v29 = vand.u32 4294901760, %v237_v18  ;;  %v224_v56 = vld [vmem:[%s4336_s1 + $0x38] sm:$0xff]  ;;  %v241_v5 = vld [vmem:[%s4336_s1 + $0xc0] sm:$0xff]  ;;  %v242_v6 = vld [vmem:[%s4336_s1 + $0xc8] sm:$0xff]  ;;  %s4576_s7 = smov (!%p3347_p4, %s2221_s7), 3 }
  0x14   : > { %2688 = vmatpush3.bf16.msra.mxu0 %v3188_v20  ;;  %v345_v30 = vand.u32 4294901760, %v238_v19  ;;  %v3210_v31 = vsub.f32 %v233_v0, %v330_v3  ;;  %v3212_v32 = vsub.f32 %v234_v1, %v333_v4  ;;  %v294_v33 = vand.u32 4294901760, %v221_v23  ;;  %v225_v11 = vld [vmem:[%s4336_s1 + $0x40] sm:$0xff]  ;;  %s2228_s26 = sshll.u32 %s4576_s7, 5 }
  0x15   : > { %2690 = vmatprep.subr.bf16.mxu0 %v3192_v22  ;;  %v297_v34 = vand.u32 4294901760, %v222_v24  ;;  %v4355_v35 = vand.u32 4294901760, %v3180_v15  ;;  %v4354_v36 = vand.u32 4294901760, %v3190_v21  ;;  %v3220_v38 = vsub.f32 %v220_v13, %v291_v17  ;;  %s3442_s5 = scalar_lea.vmem %s4335_s0, %s2228_s26 }
  0x16   : > { %v3222_v39 = vpack.c.bf16 %v345_v30, %v342_v29  ;;  %v3224_v40 = vsub.f32 %v237_v18, %v342_v29  ;;  %v4357_v41 = vand.u32 4294901760, %v3210_v31  ;;  %v3230_v43 = vsub.f32 %v238_v19, %v345_v30  ;;  %v226_v29 = vld [vmem:[%s4336_s1 + $0x48] sm:$0xff] }
  0x17   : > { %v4356_v44 = vand.u32 4294901760, %v3212_v32  ;;  %v3233_v45 = vpack.c.bf16 %v297_v34, %v294_v33  ;;  %v3235_v46 = vsub.f32 %v221_v23, %v294_v33  ;;  %v412_v48 = vsub.f32 %v3180_v15, %v4355_v35 }
  0x18   : > { %2692 = vmatpush3.bf16.msra.mxu0 %v3205_v27  ;;  %v524_v47 = vsub.f32 %v3210_v31, %v4357_v41  ;;  %v419_v49 = vsub.f32 %v3190_v21, %v4354_v36  ;;  %v348_v50 = vand.u32 4294901760, %v239_v37  ;;  %v351_v52 = vand.u32 4294901760, %v240_v42  ;;  %v210_v41 = vld [vmem:[%s3442_s5 + $0x8] sm:$0xff] }
  0x19   : > { %2694 = vmatprep.subr.bf16.mxu0 %v3222_v39  ;;  %v531_v51 = vsub.f32 %v3212_v32, %v4356_v44  ;;  %v4353_v53 = vand.u32 4294901760, %v3201_v25  ;;  %v4350_v54 = vand.u32 4294901760, %v3203_v26  ;;  %v3259_v58 = vsub.f32 %v222_v24, %v297_v34 }
  0x1a   : > { %v525_v57 = vand.u32 4294901760, %v524_v47  ;;  %v413_v59 = vand.u32 4294901760, %v412_v48  ;;  %v420_v60 = vand.u32 4294901760, %v419_v49  ;;  %v3261_v62 = vpack.c.bf16 %v351_v52, %v348_v50 }
  0x1b   : > { %v532_v61 = vand.u32 4294901760, %v531_v51  ;;  %v3263_v63 = vsub.f32 %v239_v37, %v348_v50  ;;  %v538_v0 = vsub.f32 %v3201_v25, %v4353_v53  ;;  %v545_v2 = vsub.f32 %v3203_v26, %v4350_v54 }
  0x1c   : > { %2696 = vmatpush3.bf16.msra.mxu0 %v3233_v45  ;;  %v2719_v1 = vpack.c.bf16 %v420_v60, %v413_v59  ;;  %v300_v3 = vand.u32 4294901760, %v223_v55  ;;  %v303_v4 = vand.u32 4294901760, %v224_v56  ;;  %v4349_v9 = vand.u32 4294901760, %v3207_v28 }
  0x1d   : > { %v2717_v7 = vpack.c.bf16 %v532_v61, %v525_v57  ;;  %2698 = vmatprep.subr.bf16.mxu0 %v3261_v62  ;;  %v539_v8 = vand.u32 4294901760, %v538_v0  ;;  %v4346_v10 = vand.u32 4294901760, %v3220_v38  ;;  %v3284_v12 = vsub.f32 %v240_v42, %v351_v52  ;;  %v244_v57 = vld [vmem:[%s4336_s1 + $0xd8] sm:$0xff] }
  0x1e   : > { %v546_v13 = vand.u32 4294901760, %v545_v2  ;;  %v3286_v16 = vpack.c.bf16 %v303_v4, %v300_v3  ;;  %v3288_v17 = vsub.f32 %v223_v55, %v300_v3  ;;  %v426_v18 = vsub.f32 %v3207_v28, %v4349_v9 }
  0x1f   : > { %2718 = vmatprep.subr.bf16.mxu1 %v2717_v7  ;;  %v433_v19 = vsub.f32 %v3220_v38, %v4346_v10  ;;  %v354_v23 = vand.u32 4294901760, %v241_v5  ;;  %v357_v24 = vand.u32 4294901760, %v242_v6  ;;  %v4345_v33 = vand.u32 4294901760, %v3224_v40 }
  0x20   : > { %2720 = vmatpush3.bf16.msra.mxu1 %v2719_v1  ;;  %v2721_v30 = vpack.c.bf16 %v546_v13, %v539_v8  ;;  %2700 = vmatpush3.bf16.msra.mxu0 %v3286_v16  ;;  %v4343_v34 = vand.u32 4294901760, %v3230_v43  ;;  %v306_v37 = vand.u32 4294901760, %v225_v11  ;;  %v3302_v42 = vsub.f32 %v224_v56, %v303_v4  ;;  %v243_v56 = vld [vmem:[%s4336_s1 + $0xd0] sm:$0xff] }
  0x21   : > { %v427_v47 = vand.u32 4294901760, %v426_v18  ;;  %v434_v48 = vand.u32 4294901760, %v433_v19  ;;  %v3304_v49 = vpack.c.bf16 %v357_v24, %v354_v23  ;;  %v3306_v50 = vsub.f32 %v241_v5, %v354_v23  ;;  %v227_v1 = vld [vmem:[%s4336_s1 + $0x50] sm:$0xff]  ;;  %v228_v18 = vld [vmem:[%s4336_s1 + $0x58] sm:$0xff] }
  0x22   : > { %2722 = vmatprep.subr.bf16.mxu1 %v2721_v30  ;;  %v552_v51 = vsub.f32 %v3224_v40, %v4345_v33  ;;  %v559_v52 = vsub.f32 %v3230_v43, %v4343_v34  ;;  %v309_v55 = vand.u32 4294901760, %v226_v29  ;;  %v3321_v60 = vsub.f32 %v242_v6, %v357_v24 }
  0x23   : > { %v2723_v59 = vpack.c.bf16 %v434_v48, %v427_v47  ;;  %2702 = vmatprep.subr.bf16.mxu0 %v3304_v49  ;;  %v4342_v61 = vand.u32 4294901760, %v3235_v46  ;;  %v4340_v0 = vand.u32 4294901760, %v3259_v58  ;;  %v3331_v5 = vsub.f32 %v225_v11, %v306_v37 }
  0x24   : > { %v553_v2 = vand.u32 4294901760, %v552_v51  ;;  %v560_v3 = vand.u32 4294901760, %v559_v52  ;;  %v3329_v4 = vpack.c.bf16 %v309_v55, %v306_v37  ;;  %v360_v8 = vand.u32 4294901760, %v243_v56 }
  0x25   : > { %2724 = vmatpush3.bf16.msra.mxu1 %v2723_v59  ;;  %v440_v6 = vsub.f32 %v3235_v46, %v4342_v61  ;;  %v447_v7 = vsub.f32 %v3259_v58, %v4340_v0  ;;  %v363_v13 = vand.u32 4294901760, %v244_v57  ;;  %v4339_v11 = vand.u32 4294901760, %v3263_v63 }
  0x26   : > { %v2725_v19 = vpack.c.bf16 %v560_v3, %v553_v2  ;;  %2704 = vmatpush3.bf16.msra.mxu0 %v3329_v4  ;;  %v4338_v23 = vand.u32 4294901760, %v3284_v12  ;;  %v312_v24 = vand.u32 4294901760, %v227_v1  ;;  %v3351_v30 = vsub.f32 %v226_v29, %v309_v55  ;;  %v245_v29 = vld [vmem:[%s4336_s1 + $0xe0] sm:$0xff]  ;;  %v246_v55 = vld [vmem:[%s4336_s1 + $0xe8] sm:$0xff] }
  0x27   : > { %v441_v37 = vand.u32 4294901760, %v440_v6  ;;  %v448_v47 = vand.u32 4294901760, %v447_v7  ;;  %v3353_v48 = vpack.c.bf16 %v363_v13, %v360_v8  ;;  %v3355_v51 = vsub.f32 %v243_v56, %v360_v8  ;;  %v229_v8 = vld [vmem:[%s4336_s1 + $0x60] sm:$0xff] }
  0x28   : > { %2726 = vmatprep.subr.bf16.mxu1 %v2725_v19  ;;  %v566_v52 = vsub.f32 %v3263_v63, %v4339_v11  ;;  %v573_v59 = vsub.f32 %v3284_v12, %v4338_v23  ;;  %v315_v2 = vand.u32 4294901760, %v228_v18  ;;  %v3370_v3 = vsub.f32 %v244_v57, %v363_v13 }
  0x29   : > { %4441 = vst [vmem:[#allocation3_spill] sm:$0xff] %v3353_v48  ;;  %v2727_v56 = vpack.c.bf16 %v448_v47, %v441_v37  ;;  %2706 = vmatprep.subr.bf16.mxu0 %v3353_v48  ;;  %v4341_v6 = vand.u32 4294901760, %v3288_v17  ;;  %v4344_v7 = vand.u32 4294901760, %v3302_v42  ;;  %v3379_v0 = vsub.f32 %v227_v1, %v312_v24  ;;  %v230_v1 = vld [vmem:[%s4336_s1 + $0x68] sm:$0xff] }
  0x2a   : > { %v567_v19 = vand.u32 4294901760, %v566_v52  ;;  %v574_v23 = vand.u32 4294901760, %v573_v59  ;;  %v3377_v11 = vpack.c.bf16 %v315_v2, %v312_v24  ;;  %v366_v37 = vand.u32 4294901760, %v245_v29 }
  0x2b   : > { %2728 = vmatpush3.bf16.msra.mxu1 %v2727_v56  ;;  %v454_v57 = vsub.f32 %v3288_v17, %v4341_v6  ;;  %v461_v13 = vsub.f32 %v3302_v42, %v4344_v7  ;;  %v369_v47 = vand.u32 4294901760, %v246_v55  ;;  %v4348_v52 = vand.u32 4294901760, %v3306_v50 }
  0x2c   : > { %4442 = vst [vmem:[#allocation4_spill] sm:$0xff] %v3377_v11  ;;  %v2729_v24 = vpack.c.bf16 %v574_v23, %v567_v19  ;;  %2708 = vmatpush3.bf16.msra.mxu0 %v3377_v11  ;;  %v4347_v59 = vand.u32 4294901760, %v3321_v60  ;;  %v318_v56 = vand.u32 4294901760, %v229_v8  ;;  %v3399_v6 = vsub.f32 %v228_v18, %v315_v2  ;;  %v247_v18 = vld [vmem:[%s4336_s1 + $0xf0] sm:$0xff]  ;;  %v248_v2 = vld [vmem:[%s4336_s1 + $0xf8] sm:$0xff]  ;;  %v214_v11 = vld [vmem:[%s3442_s5 + $0x28] sm:$0xff] }
  0x2d   : > { %v455_v61 = vand.u32 4294901760, %v454_v57  ;;  %v462_v34 = vand.u32 4294901760, %v461_v13  ;;  %v3401_v7 = vpack.c.bf16 %v369_v47, %v366_v37  ;;  %v3403_v33 = vsub.f32 %v245_v29, %v366_v37 }
  0x2e   : > { %2730 = vmatprep.subr.bf16.mxu1 %v2729_v24  ;;  %v580_v23 = vsub.f32 %v3306_v50, %v4348_v52  ;;  %v587_v19 = vsub.f32 %v3321_v60, %v4347_v59  ;;  %v321_v10 = vand.u32 4294901760, %v230_v1  ;;  %v3419_v57 = vsub.f32 %v246_v55, %v369_v47  ;;  %v231_v24 = vld [vmem:[%s4336_s1 + $0x70] sm:$0xff] }
  0x2f   : > { %4443 = vst [vmem:[#allocation5_spill] sm:$0xff] %v3401_v7  ;;  %v2731_v29 = vpack.c.bf16 %v462_v34, %v455_v61  ;;  %2710 = vmatprep.subr.bf16.mxu0 %v3401_v7  ;;  %v4352_v13 = vand.u32 4294901760, %v3331_v5  ;;  %v4351_v37 = vand.u32 4294901760, %v3351_v30  ;;  %v3428_v54 = vsub.f32 %v229_v8, %v318_v56 }
  0x30   : > { %v581_v59 = vand.u32 4294901760, %v580_v23  ;;  %v588_v52 = vand.u32 4294901760, %v587_v19  ;;  %v3426_v9 = vpack.c.bf16 %v321_v10, %v318_v56  ;;  %v372_v55 = vand.u32 4294901760, %v247_v18  ;;  %v232_v23 = vld [vmem:[%s4336_s1 + $0x78] sm:$0xff] }
  0x31   : > { %2732 = vmatpush3.bf16.msra.mxu1 %v2731_v29  ;;  %v468_v34 = vsub.f32 %v3331_v5, %v4352_v13  ;;  %v475_v61 = vsub.f32 %v3351_v30, %v4351_v37  ;;  %v375_v47 = vand.u32 4294901760, %v248_v2  ;;  %v4360_v56 = vand.u32 4294901760, %v3355_v51 }
  0x32   : > { %4444 = vst [vmem:[#allocation6_spill] sm:$0xff] %v3426_v9  ;;  %v2733_v8 = vpack.c.bf16 %v588_v52, %v581_v59  ;;  %2712 = vmatpush3.bf16.msra.mxu0 %v3426_v9  ;;  %v4361_v19 = vand.u32 4294901760, %v3370_v3  ;;  %v324_v29 = vand.u32 4294901760, %v231_v24  ;;  %v3447_v37 = vsub.f32 %v230_v1, %v321_v10 }
  0x33   : > { %v469_v13 = vand.u32 4294901760, %v468_v34  ;;  %v476_v53 = vand.u32 4294901760, %v475_v61  ;;  %v3449_v36 = vpack.c.bf16 %v375_v47, %v372_v55  ;;  %v3451_v35 = vsub.f32 %v247_v18, %v372_v55  ;;  %v209_v34 = vld [vmem:[%s3442_s5] sm:$0xff] }
  0x34   : > { %2734 = vmatprep.subr.bf16.mxu1 %v2733_v8  ;;  %v594_v52 = vsub.f32 %v3355_v51, %v4360_v56  ;;  %v601_v59 = vsub.f32 %v3370_v3, %v4361_v19  ;;  %v327_v44 = vand.u32 4294901760, %v232_v23  ;;  %v3461_v10 = vsub.f32 %v248_v2, %v375_v47 }
  0x35   : > { %4445 = vst [vmem:[#allocation7_spill] sm:$0xff] %v3449_v36  ;;  %v2735_v9 = vpack.c.bf16 %v476_v53, %v469_v13  ;;  %2714 = vmatprep.subr.bf16.mxu0 %v3449_v36  ;;  %v4362_v1 = vand.u32 4294901760, %v3379_v0  ;;  %v4363_v18 = vand.u32 4294901760, %v3399_v6  ;;  %v3468_v56 = vsub.f32 %v231_v24, %v324_v29 }
  0x36   : > { %v595_v61 = vand.u32 4294901760, %v594_v52  ;;  %v602_v55 = vand.u32 4294901760, %v601_v59  ;;  %v3466_v8 = vpack.c.bf16 %v327_v44, %v324_v29  ;;  %v3476_v13 = vand.u32 4294901760, %v210_v41 }
  0x37   : > { %2736 = vmatpush3.bf16.msra.mxu1 %v2735_v9  ;;  %v482_v53 = vsub.f32 %v3379_v0, %v4362_v1  ;;  %v489_v2 = vsub.f32 %v3399_v6, %v4363_v18  ;;  %v4366_v47 = vand.u32 4294901760, %v3403_v33  ;;  %v4372_v52 = vand.u32 4294901760, %v3419_v57 }
  0x38   : > { %4446 = vst [vmem:[#allocation8_spill] sm:$0xff] %v3466_v8  ;;  %4447 = vst [vmem:[#allocation9_spill] sm:$0xff] %v3476_v13  ;;  %v2737_v19 = vpack.c.bf16 %v602_v55, %v595_v61  ;;  %2716 = vmatpush3.bf16.msra.mxu0 %v3466_v8  ;;  %v2749_v9 = vpack.c.bf16 %v3212_v32, %v3210_v31  ;;  %v3483_v24 = vand.u32 4294901760, %v209_v34  ;;  %633 = vmatprep.mubr.f32.mxu1 %v3476_v13 }
  0x39   : > { %v483_v29 = vand.u32 4294901760, %v482_v53  ;;  %v490_v59 = vand.u32 4294901760, %v489_v2  ;;  %v3486_v1 = vsub.f32 %v210_v41, %v3476_v13  ;;  %v608_v18 = vsub.f32 %v3403_v33, %v4366_v47 }
  0x3a   : > { %2738 = vmatprep.subr.bf16.mxu1 %v2737_v19  ;;  %v615_v61 = vsub.f32 %v3419_v57, %v4372_v52  ;;  %2750 = vmatprep.subr.bf16.mxu0 %v2749_v9  ;;  %v3496_v55 = vsub.f32 %v209_v34, %v3483_v24  ;;  %v4371_v53 = vand.u32 4294901760, %v3428_v54  ;;  %v4373_v41 = vand.u32 4294901760, %v3447_v37 }
  0x3b   : > { %v3500_v2 = vsub.f32 %v232_v23, %v327_v44  ;;  %v2739_v8 = vpack.c.bf16 %v490_v59, %v483_v29  ;;  %v4374_v47 = vand.u32 4294901760, %v3486_v1  ;;  %v609_v36 = vand.u32 4294901760, %v608_v18 }
  0x3c   : > { %4448 = vst [vmem:[#allocation10_spill] sm:$0xff] %v3496_v55  ;;  %v616_v13 = vand.u32 4294901760, %v615_v61  ;;  %v4379_v19 = vand.u32 4294901760, %v3496_v55  ;;  %v496_v9 = vsub.f32 %v3428_v54, %v4371_v53  ;;  %v503_v34 = vsub.f32 %v3447_v37, %v4373_v41 }
  0x3d   : > { %2740 = vmatpush3.bf16.msra.mxu1 %v2739_v8  ;;  %v380_v44 = vsub.f32 %v3486_v1, %v4374_v47  ;;  %v2751_v23 = vpack.c.bf16 %v3190_v21, %v3180_v15  ;;  %v4380_v18 = vand.u32 4294901760, %v3451_v35  ;;  %v4381_v29 = vand.u32 4294901760, %v3461_v10 }
  0x3e   : > { %v2741_v59 = vpack.c.bf16 %v616_v13, %v609_v36  ;;  %v386_v61 = vsub.f32 %v3496_v55, %v4379_v19  ;;  %v497_v53 = vand.u32 4294901760, %v496_v9  ;;  %v504_v52 = vand.u32 4294901760, %v503_v34 }
  0x3f   : > { %v381_v41 = vand.u32 4294901760, %v380_v44  ;;  %v622_v8 = vsub.f32 %v3451_v35, %v4380_v18  ;;  %v629_v47 = vsub.f32 %v3461_v10, %v4381_v29  ;;  %v4383_v7 = vand.u32 4294901760, %v3468_v56 }
  0x40   : > { %2742 = vmatprep.subr.bf16.mxu1 %v2741_v59  ;;  %v387_v36 = vand.u32 4294901760, %v386_v61  ;;  %v2743_v13 = vpack.c.bf16 %v504_v52, %v497_v53  ;;  %v2753_v9 = vpack.c.bf16 %v3203_v26, %v3201_v25  ;;  %v4382_v34 = vand.u32 4294901760, %v3500_v2  ;;  %v213_v52 = vld [vmem:[%s3442_s5 + $0x20] sm:$0xff] }
  0x41   : > { %382 = vmatprep.mubr.f32.mxu0 %v381_v41  ;;  %v623_v44 = vand.u32 4294901760, %v622_v8  ;;  %v630_v19 = vand.u32 4294901760, %v629_v47  ;;  %v510_v18 = vsub.f32 %v3468_v56, %v4383_v7  ;;  %v3537_v61 = vand.u32 4294901760, %v214_v11 }
  0x42   : > { %388 = vmatmul.mubr.f32.vlgmr.msra.gmra.mrb[0].mxu0 %v387_v36  ;;  %2744 = vmatpush3.bf16.msra.mxu1 %v2743_v13  ;;  %v517_v59 = vsub.f32 %v3500_v2, %v4382_v34  ;;  %v2755_v41 = vpack.c.bf16 %v3220_v38, %v3207_v28  ;;  %v2757_v8 = vpack.c.bf16 %v3230_v43, %v3224_v40  ;;  %v3547_v13 = vand.u32 4294901760, %v213_v52 }
  0x43   : > { %2752 = vmatpush3.bf16.msra.mxu0 %v2751_v23  ;;  %v2745_v53 = vpack.c.bf16 %v630_v19, %v623_v44  ;;  %v511_v29 = vand.u32 4294901760, %v510_v18  ;;  %v3545_v36 = vsub.f32 %v214_v11, %v3537_v61  ;;  %v2759_v23 = vpack.c.bf16 %v3259_v58, %v3235_v46 }
  0x44   : > { %2754 = vmatprep.subr.bf16.mxu0 %v2753_v9  ;;  %v518_v47 = vand.u32 4294901760, %v517_v59  ;;  %v2761_v19 = vpack.c.bf16 %v3284_v12, %v3263_v63  ;;  %v4449_v18 = vand.u32 4294901760, %v3210_v31  ;;  %v4450_v9 = vand.u32 4294901760, %v3212_v32 }
  0x45   : > { %2746 = vmatprep.subr.bf16.mxu1 %v2745_v53  ;;  %v394_v59 = vand.u32 4294901760, %v3545_v36  ;;  %v3559_v11 = vsub.f32 %v213_v52, %v3547_v13  ;;  %v4451_v53 = vand.u32 4294901760, %v3180_v15  ;;  %v4453_v7 = vand.u32 4294901760, %v3201_v25 }
  0x46   : > { %v2747_v34 = vpack.c.bf16 %v518_v47, %v511_v29  ;;  %v2813_v44 = vpack.c.bf16 %v4450_v9, %v4449_v18  ;;  %v4452_v29 = vand.u32 4294901760, %v3190_v21  ;;  %v4454_v55 = vand.u32 4294901760, %v3203_v26 }
  0x47   : > { %2756 = vmatpush3.bf16.msra.mxu0 %v2755_v41  ;;  %v4455_v31 = vand.u32 4294901760, %v3207_v28  ;;  %v4456_v32 = vand.u32 4294901760, %v3220_v38  ;;  %v4457_v52 = vand.u32 4294901760, %v3224_v40  ;;  %v4458_v15 = vand.u32 4294901760, %v3230_v43 }
  0x48   : > { %v2815_v47 = vpack.c.bf16 %v4452_v29, %v4451_v53  ;;  %v3569_v48 = vpack.c.bf16 %v4454_v55, %v4453_v7  ;;  %2748 = vmatpush3.bf16.msra.mxu1 %v2747_v34  ;;  %2758 = vmatprep.subr.bf16.mxu0 %v2757_v8  ;;  %v4459_v25 = vand.u32 4294901760, %v3235_v46  ;;  %v4460_v26 = vand.u32 4294901760, %v3259_v58 }
  0x49   : > { %v3575_v41 = vpack.c.bf16 %v4456_v32, %v4455_v31  ;;  %v3581_v21 = vpack.c.bf16 %v4458_v15, %v4457_v52  ;;  %2782 = vmatprep.subr.bf16.mxu1 %v3178_v14  ;;  %v395_v28 = vsub.f32 %v3545_v36, %v394_v59  ;;  %v400_v38 = vand.u32 4294901760, %v3559_v11 }
  0x4a   : > { %v3587_v7 = vpack.c.bf16 %v4460_v26, %v4459_v25  ;;  %v4461_v40 = vand.u32 4294901760, %v3263_v63  ;;  %v4462_v43 = vand.u32 4294901760, %v3284_v12  ;;  %v4463_v46 = vand.u32 4294901760, %v3288_v17  ;;  %v4471_v25 = vld [vmem:[#allocation4_spill] sm:$0xff]  ;;  %v265_v26 = vld [vmem:[%s4336_s1 + $0x180] sm:$0xff] }
  0x4b   : > { %v4464_v58 = vand.u32 4294901760, %v3302_v42  ;;  %v4465_v8 = vand.u32 4294901760, %v3306_v50  ;;  %v4466_v18 = vand.u32 4294901760, %v3321_v60  ;;  %v4467_v53 = vand.u32 4294901760, %v3331_v5  ;;  %635 = vmatmul.mubr.f32.vlgmr.msra.gmra.mrb[0].mxu1 %v3483_v24  ;;  %2760 = vmatpush3.bf16.msra.mxu0 %v2759_v23 }
  0x4c   : > { %v3598_v55 = vpack.c.bf16 %v4462_v43, %v4461_v40  ;;  %v4468_v63 = vand.u32 4294901760, %v3351_v30  ;;  %v2763_v12 = vpack.c.bf16 %v3302_v42, %v3288_v17  ;;  %v396_v31 = vand.u32 4294901760, %v395_v28  ;;  %2784 = vmatpush3.bf16.msra.mxu1 %v3188_v20  ;;  %2762 = vmatprep.subr.bf16.mxu0 %v2761_v19  ;;  %v4470_v19 = vld [vmem:[#allocation3_spill] sm:$0xff]  ;;  %v266_v28 = vld [vmem:[%s4336_s1 + $0x188] sm:$0xff]  ;;  %v4472_v40 = vld [vmem:[#allocation5_spill] sm:$0xff] }
  0x4d   : > { %v3604_v34 = vpack.c.bf16 %v4464_v58, %v4463_v46  ;;  %v3610_v9 = vpack.c.bf16 %v4466_v18, %v4465_v8  ;;  %v401_v32 = vsub.f32 %v3559_v11, %v400_v38  ;;  %v2765_v52 = vpack.c.bf16 %v3321_v60, %v3306_v50  ;;  %2786 = vmatprep.subr.bf16.mxu1 %v3192_v22  ;;  %v4473_v43 = vld [vmem:[#allocation10_spill] sm:$0xff]  ;;  %v249_v46 = vld [vmem:[%s4336_s1 + $0x100] sm:$0xff] }
  0x4e   : > { %v3616_v29 = vpack.c.bf16 %v4468_v63, %v4467_v53  ;;  %397 = vmatprep.mubr.f32.mxu0 %v396_v31  ;;  %640 = vmatprep.mubr.f32.mxu1 %v3537_v61  ;;  %v2767_v17 = vpack.c.bf16 %v3351_v30, %v3331_v5  ;;  %v2769_v42 = vpack.c.bf16 %v3370_v3, %v3355_v51  ;;  %v4469_v50 = vand.u32 4294901760, %v3486_v1  ;;  %v4474_v18 = vld [vmem:[#allocation6_spill] sm:$0xff]  ;;  %v4475_v53 = vld [vmem:[#allocation7_spill] sm:$0xff]  ;;  %v4476_v31 = vld [vmem:[#allocation9_spill] sm:$0xff] }
  0x4f   : > { %v402_v15 = vand.u32 4294901760, %v401_v32  ;;  %2764 = vmatpush3.bf16.msra.mxu0 %v2763_v12  ;;  %642 = vmatmul.mubr.f32.gmra.mrb[2].mxu1 %v3547_v13  ;;  %v2771_v60 = vpack.c.bf16 %v3399_v6, %v3379_v0  ;;  %v2773_v5 = vpack.c.bf16 %v3419_v57, %v3403_v33  ;;  %v2775_v30 = vpack.c.bf16 %v3447_v37, %v3428_v54 }
  0x50   : > { %2788 = vmatpush3.bf16.msra.mxu1 %v3205_v27  ;;  %2766 = vmatprep.subr.bf16.mxu0 %v2765_v52  ;;  %v2779_v23 = vpack.c.bf16 %v3500_v2, %v3468_v56  ;;  %v1248_v58 = vand.u32 4294901760, %v265_v26  ;;  %v1251_v8 = vand.u32 4294901760, %v266_v28  ;;  %v1200_v63 = vand.u32 4294901760, %v249_v46  ;;  %v267_v52 = vld [vmem:[%s4336_s1 + $0x190] sm:$0xff] }
  0x51   : > { %2790 = vmatprep.subr.bf16.mxu1 %v3222_v39  ;;  %403 = vmatmul.mubr.f32.gmra.mrb[2].mxu0 %v402_v15  ;;  %v4477_v15 = vld [vmem:[#allocation8_spill] sm:$0xff] }
  0x52   : > { %777 = vmatprep.mubr.f32.mxu0 %v3486_v1  ;;  %893 = vmatprep.mubr.f32.mxu1 %v4469_v50  ;;  %v2777_v1 = vpack.c.bf16 %v3461_v10, %v3451_v35  ;;  %v3677_v32 = vsub.f32 %v265_v26, %v1248_v58  ;;  %v252_v50 = vld [vmem:[%s4336_s1 + $0x118] sm:$0xff]  ;;  %v4482_v26 = vand.u32 4294901760, %v3399_v6 }
  0x53   : > { %2768 = vmatpush3.bf16.msra.mxu0 %v2767_v17 }
  0x54   : > { %2792 = vmatpush3.bf16.msra.mxu1 %v3233_v45  ;;  %2770 = vmatprep.subr.bf16.mxu0 %v2769_v42  ;;  %v251_v42 = vld [vmem:[%s4336_s1 + $0x110] sm:$0xff] }
  0x55   : > { %2794 = vmatprep.subr.bf16.mxu1 %v3261_v62 }
  0x57   : > { %2772 = vmatpush3.bf16.msra.mxu0 %v2771_v60  ;;  %v4478_v60 = vand.u32 4294901760, %v3355_v51  ;;  %v4484_v51 = vand.u32 4294901760, %v3419_v57  ;;  %v4487_v57 = vand.u32 4294901760, %v3451_v35  ;;  %v3750_v35 = vpack.c.bf16 %v1251_v8, %v1248_v58 }
  0x58   : > { %2796 = vmatpush3.bf16.msra.mxu1 %v3286_v16  ;;  %2774 = vmatprep.subr.bf16.mxu0 %v2773_v5  ;;  %v4479_v5 = vand.u32 4294901760, %v3370_v3  ;;  %v269_v3 = vld [vmem:[%s4336_s1 + $0x1a0] sm:$0xff] }
  0x59   : > { %2798 = vmatprep.subr.bf16.mxu1 %v3304_v49 }
  0x5b   : > { %2776 = vmatpush3.bf16.msra.mxu0 %v2775_v30  ;;  %v2833_v30 = vpack.c.bf16 %v4479_v5, %v4478_v60  ;;  %v4488_v60 = vand.u32 4294901760, %v3461_v10 }
  0x5c   : > { %2800 = vmatpush3.bf16.msra.mxu1 %v3329_v4  ;;  %2778 = vmatprep.subr.bf16.mxu0 %v2777_v1 }
  0x5d   : > { %2802 = vmatprep.subr.bf16.mxu1 %v4470_v19  ;;  %v3737_v5 = vpack.c.bf16 %v4488_v60, %v4487_v57 }
  0x5f   : > { %2780 = vmatpush3.bf16.msra.mxu0 %v2779_v23  ;;  %v4481_v23 = vand.u32 4294901760, %v3379_v0  ;;  %v4485_v0 = vand.u32 4294901760, %v3428_v54  ;;  %v4489_v54 = vand.u32 4294901760, %v3468_v56  ;;  %v253_v56 = vld [vmem:[%s4336_s1 + $0x120] sm:$0xff] }
  0x60   : > { %2804 = vmatpush3.bf16.msra.mxu1 %v4471_v25  ;;  %2814 = vmatprep.subr.bf16.mxu0 %v2813_v44  ;;  %v250_v44 = vld [vmem:[%s4336_s1 + $0x108] sm:$0xff] }
  0x61   : > { %2806 = vmatprep.subr.bf16.mxu1 %v4472_v40  ;;  %v1203_v12 = vand.u32 4294901760, %v250_v44 }
  0x62   : > { %780 = vmatmul.mubr.f32.vlgmr.msra.gmra.mrb[4].mxu0 %v4473_v43 }
  0x63   : > { %2816 = vmatpush3.bf16.msra.mxu0 %v2815_v47  ;;  %786 = vmatprep.mubr.f32.mxu0 %v3545_v36  ;;  %v3679_v47 = vsub.f32 %v266_v28, %v1251_v8  ;;  %v3692_v17 = vsub.f32 %v250_v44, %v1203_v12  ;;  %v3711_v28 = vpack.c.bf16 %v4482_v26, %v4481_v23  ;;  %v1209_v23 = vand.u32 4294901760, %v252_v50 }
  0x64   : > { %2808 = vmatpush3.bf16.msra.mxu1 %v4474_v18  ;;  %2818 = vmatprep.subr.bf16.mxu0 %v3569_v48  ;;  %v268_v48 = vld [vmem:[%s4336_s1 + $0x198] sm:$0xff]  ;;  %v3754_v26 = vpack.c.bf16 %v1203_v12, %v1200_v63  ;;  %v271_v12 = vld [vmem:[%s4336_s1 + $0x1b0] sm:$0xff] }
  0x65   : > { %2810 = vmatprep.subr.bf16.mxu1 %v4475_v53  ;;  %v1257_v1 = vand.u32 4294901760, %v268_v48 }
  0x66   : > { %789 = vmatmul.mubr.f32.gmra.mrb[6].mxu0 %v3559_v11  ;;  %4491 = vst [vmem:[#allocation3_spill] sm:$0xff] %v3754_v26 }
  0x67   : > { %2820 = vmatpush3.bf16.msra.mxu0 %v3575_v41  ;;  %1074 = vmatprep.mubr.f32.mxu0 %v4476_v31  ;;  %v3690_v41 = vsub.f32 %v249_v46, %v1200_v63  ;;  %v4483_v46 = vand.u32 4294901760, %v3403_v33  ;;  %v4486_v33 = vand.u32 4294901760, %v3447_v37  ;;  %v4490_v37 = vand.u32 4294901760, %v3500_v2  ;;  %v254_v2 = vld [vmem:[%s4336_s1 + $0x128] sm:$0xff] }
  0x68   : > { %2812 = vmatpush3.bf16.msra.mxu1 %v4477_v15  ;;  %2822 = vmatprep.subr.bf16.mxu0 %v3581_v21  ;;  %v1254_v21 = vand.u32 4294901760, %v267_v52 }
  0x69   : > { %2846 = vmatprep.subr.bf16.mxu1 %v3178_v14  ;;  %v4480_v14 = vand.u32 4294901760, %v4473_v43  ;;  %v3717_v44 = vpack.c.bf16 %v4484_v51, %v4483_v46  ;;  %v4399_v43 = vand.u32 4294901760, %v3677_v32  ;;  %v3731_v6 = vpack.c.bf16 %v4486_v33, %v4485_v0 }
  0x6a   : > { %v3748_v36 = vpack.c.bf16 %v4490_v37, %v4489_v54  ;;  %v4393_v10 = vand.u32 4294901760, %v3690_v41  ;;  %v3756_v46 = vsub.f32 %v267_v52, %v1254_v21  ;;  %v3758_v51 = vsub.f32 %v268_v48, %v1257_v1  ;;  %v212_v52 = vld [vmem:[%s3442_s5 + $0x18] sm:$0xff] }
  0x6b   : > { %897 = vmatmul.mubr.f32.vlgmr.msra.gmra.mrb[4].mxu1 %v4480_v14  ;;  %2824 = vmatpush3.bf16.msra.mxu0 %v3587_v7  ;;  %v4394_v7 = vand.u32 4294901760, %v3679_v47  ;;  %v1206_v14 = vand.u32 4294901760, %v251_v42  ;;  %v1442_v8 = vsub.f32 %v3677_v32, %v4399_v43  ;;  %v1212_v48 = vand.u32 4294901760, %v253_v56 }
  0x6c   : > { %2848 = vmatpush3.bf16.msra.mxu1 %v3188_v20  ;;  %904 = vmatprep.mubr.f32.mxu1 %v394_v59  ;;  %v270_v20 = vld [vmem:[%s4336_s1 + $0x1a8] sm:$0xff]  ;;  %v4388_v59 = vand.u32 4294901760, %v3692_v17  ;;  %v3807_v60 = vand.u32 4294901760, %v212_v52 }
  0x6d   : > { %2826 = vmatprep.subr.bf16.mxu0 %v3598_v55  ;;  %2850 = vmatprep.subr.bf16.mxu1 %v3192_v22  ;;  %v1260_v22 = vand.u32 4294901760, %v269_v3  ;;  %v3769_v55 = vpack.c.bf16 %v1257_v1, %v1254_v21  ;;  %v1263_v58 = vand.u32 4294901760, %v270_v20  ;;  %v1449_v63 = vsub.f32 %v3679_v47, %v4394_v7 }
  0x6e   : > { %v3782_v11 = vpack.c.bf16 %v1209_v23, %v1206_v14  ;;  %v1215_v21 = vand.u32 4294901760, %v254_v2  ;;  %v1330_v1 = vsub.f32 %v3690_v41, %v4393_v10  ;;  %v1443_v33 = vand.u32 4294901760, %v1442_v8  ;;  %4493 = vst [vmem:[#allocation5_spill] sm:$0xff] %v3807_v60 }
  0x6f   : > { %908 = vmatmul.mubr.f32.gmra.mrb[6].mxu1 %v400_v38  ;;  %2828 = vmatpush3.bf16.msra.mxu0 %v3604_v34  ;;  %4492 = vst [vmem:[#allocation4_spill] sm:$0xff] %v3769_v55  ;;  %v3784_v38 = vsub.f32 %v251_v42, %v1206_v14  ;;  %v3786_v34 = vsub.f32 %v252_v50, %v1209_v23  ;;  %v1266_v50 = vand.u32 4294901760, %v271_v12  ;;  %v1450_v57 = vand.u32 4294901760, %v1449_v63  ;;  %v255_v23 = vld [vmem:[%s4336_s1 + $0x130] sm:$0xff] }
  0x70   : > { %2852 = vmatpush3.bf16.msra.mxu1 %v3205_v27  ;;  %2830 = vmatprep.subr.bf16.mxu0 %v3610_v9  ;;  %v1337_v27 = vsub.f32 %v3692_v17, %v4388_v59  ;;  %v272_v9 = vld [vmem:[%s4336_s1 + $0x1b8] sm:$0xff]  ;;  %v3800_v42 = vsub.f32 %v269_v3, %v1260_v22  ;;  %v3805_v0 = vpack.c.bf16 %v1263_v58, %v1260_v22 }
  0x71   : > { %2854 = vmatprep.subr.bf16.mxu1 %v3222_v39  ;;  %1185 = vmatprep.mubr.f32.mxu1 %v4476_v31  ;;  %v4392_v39 = vand.u32 4294901760, %v3756_v46  ;;  %v4391_v31 = vand.u32 4294901760, %v3758_v51  ;;  %v3810_v14 = vsub.f32 %v270_v20, %v1263_v58  ;;  %v1269_v3 = vand.u32 4294901760, %v272_v9 }
  0x72   : > { %v4389_v54 = vand.u32 4294901760, %v3784_v38  ;;  %v4390_v37 = vand.u32 4294901760, %v3786_v34  ;;  %v3821_v22 = vpack.c.bf16 %v1215_v21, %v1212_v48  ;;  %v1338_v20 = vand.u32 4294901760, %v1337_v27  ;;  %v274_v27 = vld [vmem:[%s4336_s1 + $0x1c8] sm:$0xff] }
  0x73   : > { %2832 = vmatpush3.bf16.msra.mxu0 %v3616_v29  ;;  %v256_v29 = vld [vmem:[%s4336_s1 + $0x138] sm:$0xff]  ;;  %v3825_v58 = vsub.f32 %v254_v2, %v1215_v21  ;;  %v3827_v8 = vsub.f32 %v271_v12, %v1266_v50  ;;  %v1456_v63 = vsub.f32 %v3756_v46, %v4392_v39  ;;  %v1463_v59 = vsub.f32 %v3758_v51, %v4391_v31  ;;  %v273_v2 = vld [vmem:[%s4336_s1 + $0x1c0] sm:$0xff] }
  0x74   : > { %2856 = vmatpush3.bf16.msra.mxu1 %v3233_v45  ;;  %2834 = vmatprep.subr.bf16.mxu0 %v2833_v30  ;;  %4494 = vst [vmem:[#allocation10_spill] sm:$0xff] %v3821_v22  ;;  %v3823_v45 = vsub.f32 %v253_v56, %v1212_v48  ;;  %v1331_v30 = vand.u32 4294901760, %v1330_v1  ;;  %v1218_v56 = vand.u32 4294901760, %v255_v23  ;;  %v1221_v48 = vand.u32 4294901760, %v256_v29 }
  0x75   : > { %2858 = vmatprep.subr.bf16.mxu1 %v3261_v62  ;;  %4495 = vst [vmem:[#allocation6_spill] sm:$0xff] %v3827_v8  ;;  %v3836_v62 = vpack.c.bf16 %v1450_v57, %v1443_v33  ;;  %v3842_v12 = vsub.f32 %v212_v52, %v3807_v60  ;;  %v3846_v21 = vpack.c.bf16 %v1269_v3, %v1266_v50  ;;  %v4397_v50 = vand.u32 4294901760, %v3810_v14 }
  0x76   : > { %v1351_v1 = vsub.f32 %v3786_v34, %v4390_v37  ;;  %v3858_v52 = vpack.c.bf16 %v1338_v20, %v1331_v30  ;;  %v1457_v33 = vand.u32 4294901760, %v1456_v63  ;;  %v1464_v57 = vand.u32 4294901760, %v1463_v59  ;;  %v3867_v37 = vld [vmem:[%s4336_s1 + $0x140] sm:$0xff] }
  0x77   : > { %2836 = vmatpush3.bf16.msra.mxu0 %v3711_v28  ;;  %4496 = vst [vmem:[#allocation7_spill] sm:$0xff] %v3846_v21  ;;  %v1344_v28 = vsub.f32 %v3784_v38, %v4389_v54  ;;  %v1272_v54 = vand.u32 4294901760, %v273_v2  ;;  %v1275_v30 = vand.u32 4294901760, %v274_v27  ;;  %v4396_v59 = vand.u32 4294901760, %v3825_v58 }
  0x78   : > { %2860 = vmatpush3.bf16.msra.mxu1 %v3286_v16  ;;  %2838 = vmatprep.subr.bf16.mxu0 %v3717_v44  ;;  %v3860_v16 = vsub.f32 %v272_v9, %v1269_v3  ;;  %v4398_v44 = vand.u32 4294901760, %v3800_v42  ;;  %v4395_v9 = vand.u32 4294901760, %v3823_v45  ;;  %v3876_v3 = vpack.c.bf16 %v1221_v48, %v1218_v56 }
  0x79   : > { %2862 = vmatprep.subr.bf16.mxu1 %v3304_v49  ;;  %v3872_v49 = vld [vmem:[%s4336_s1 + $0x148] sm:$0xff]  ;;  %v4400_v20 = vand.u32 4294901760, %v3842_v12  ;;  %v3882_v63 = vsub.f32 %v255_v23, %v1218_v56  ;;  %v3884_v31 = vsub.f32 %v256_v29, %v1221_v48  ;;  %v1345_v39 = vand.u32 4294901760, %v1344_v28 }
  0x7a   : > { %4497 = vst [vmem:[#allocation9_spill] sm:$0xff] %v3860_v16  ;;  %4498 = vst [vmem:[#allocation8_spill] sm:$0xff] %v3876_v3  ;;  %v1352_v10 = vand.u32 4294901760, %v1351_v1  ;;  %v1477_v7 = vsub.f32 %v3810_v14, %v4397_v50  ;;  %v3895_v23 = vpack.c.bf16 %v1464_v57, %v1457_v33  ;;  %v1358_v29 = vsub.f32 %v3823_v45, %v4395_v9  ;;  %v276_v57 = vld [vmem:[%s4336_s1 + $0x1d8] sm:$0xff] }
  0x7b   : > { %2840 = vmatpush3.bf16.msra.mxu0 %v3731_v6  ;;  %4499 = vst [vmem:[#allocation11_spill] sm:$0xff] %v3882_v63  ;;  %4500 = vst [vmem:[#allocation12_spill] sm:$0xff] %v3884_v31  ;;  %v1470_v6 = vsub.f32 %v3800_v42, %v4398_v44  ;;  %v4401_v56 = vand.u32 4294901760, %v3827_v8  ;;  %v4404_v48 = vand.u32 4294901760, %v3860_v16  ;;  %v3906_v28 = vpack.c.bf16 %v1275_v30, %v1272_v54 }
  0x7c   : > { %2864 = vmatpush3.bf16.msra.mxu1 %v3329_v4  ;;  %2842 = vmatprep.subr.bf16.mxu0 %v3737_v5  ;;  %v1224_v4 = vand.u32 4294901760, %v3867_v37  ;;  %v1227_v5 = vand.u32 4294901760, %v3872_v49  ;;  %v3908_v1 = vsub.f32 %v273_v2, %v1272_v54  ;;  %v1365_v33 = vsub.f32 %v3825_v58, %v4396_v59  ;;  %v259_v2 = vld [vmem:[%s4336_s1 + $0x150] sm:$0xff]  ;;  %v260_v59 = vld [vmem:[%s4336_s1 + $0x158] sm:$0xff] }
  0x7d   : > { %2866 = vmatprep.subr.bf16.mxu1 %v4470_v19  ;;  %v275_v19 = vld [vmem:[%s4336_s1 + $0x1d0] sm:$0xff]  ;;  %4501 = vst [vmem:[#allocation13_spill] sm:$0xff] %v3906_v28  ;;  %v1298_v9 = vsub.f32 %v3842_v12, %v4400_v20  ;;  %v3923_v54 = vsub.f32 %v274_v27, %v1275_v30  ;;  %v1478_v43 = vand.u32 4294901760, %v1477_v7  ;;  %v1359_v27 = vand.u32 4294901760, %v1358_v29 }
  0x7e   : > { %v1281_v30 = vand.u32 4294901760, %v276_v57  ;;  %v1484_v20 = vsub.f32 %v3827_v8, %v4401_v56  ;;  %v1491_v50 = vsub.f32 %v3860_v16, %v4404_v48  ;;  %v1230_v7 = vand.u32 4294901760, %v259_v2 }
  0x7f   : > { %2844 = vmatpush3.bf16.msra.mxu0 %v3748_v36  ;;  %v3921_v36 = vpack.c.bf16 %v1352_v10, %v1345_v39  ;;  %v3934_v10 = vpack.c.bf16 %v1227_v5, %v1224_v4  ;;  %v1278_v39 = vand.u32 4294901760, %v275_v19  ;;  %v1299_v44 = vand.u32 4294901760, %v1298_v9  ;;  %v278_v9 = vld [vmem:[%s4336_s1 + $0x1e8] sm:$0xff] }
  0x80   : > { %2868 = vmatpush3.bf16.msra.mxu1 %v4471_v25  ;;  %2878 = vmatprep.subr.bf16.mxu0 %v3750_v35  ;;  %v1471_v25 = vand.u32 4294901760, %v1470_v6  ;;  %v1233_v6 = vand.u32 4294901760, %v260_v59  ;;  %v4503_v29 = vand.u32 4294901760, %v3882_v63  ;;  %v4504_v8 = vand.u32 4294901760, %v3884_v31 }
  0x81   : > { %2870 = vmatprep.subr.bf16.mxu1 %v4472_v40  ;;  %4502 = vst [vmem:[#allocation14_spill] sm:$0xff] %v3934_v10  ;;  %v1366_v40 = vand.u32 4294901760, %v1365_v33  ;;  %v3975_v16 = vsub.f32 %v276_v57, %v1281_v30  ;;  %v1492_v33 = vand.u32 4294901760, %v1491_v50 }
  0x82   : > { %1076 = vmatmul.mubr.f32.vlgmr.msra.gmra.mrb[8].mxu0 %v3483_v24  ;;  %v1372_v56 = vsub.f32 %v3882_v63, %v4503_v29  ;;  %v1379_v48 = vsub.f32 %v3884_v31, %v4504_v8  ;;  %v3965_v29 = vsub.f32 %v3867_v37, %v1224_v4  ;;  %v3968_v8 = vsub.f32 %v3872_v49, %v1227_v5 }
  0x83   : > { %2880 = vmatpush3.bf16.msra.mxu0 %v3754_v26  ;;  %1081 = vmatprep.mubr.f32.mxu0 %v3537_v61  ;;  %v277_v26 = vld [vmem:[%s4336_s1 + $0x1e0] sm:$0xff]  ;;  %v3970_v31 = vsub.f32 %v275_v19, %v1278_v39  ;;  %v3973_v63 = vpack.c.bf16 %v1281_v30, %v1278_v39  ;;  %v3984_v37 = vpack.c.bf16 %v1366_v40, %v1359_v27  ;;  %v1287_v5 = vand.u32 4294901760, %v278_v9 }
  0x84   : > { %2872 = vmatpush3.bf16.msra.mxu1 %v4474_v18  ;;  %2882 = vmatprep.subr.bf16.mxu0 %v3769_v55  ;;  %v3962_v55 = vpack.c.bf16 %v1478_v43, %v1471_v25  ;;  %v1485_v18 = vand.u32 4294901760, %v1484_v20  ;;  %v262_v43 = vld [vmem:[%s4336_s1 + $0x168] sm:$0xff]  ;;  %v3986_v49 = vpack.c.bf16 %v1233_v6, %v1230_v7  ;;  %v1284_v4 = vand.u32 4294901760, %v277_v26 }
  0x85   : > { %2874 = vmatprep.subr.bf16.mxu1 %v4475_v53  ;;  %4505 = vst [vmem:[#allocation15_spill] sm:$0xff] %v3973_v63  ;;  %v261_v53 = vld [vmem:[%s4336_s1 + $0x160] sm:$0xff]  ;;  %v1373_v50 = vand.u32 4294901760, %v1372_v56  ;;  %v1380_v20 = vand.u32 4294901760, %v1379_v48  ;;  %v4506_v19 = vand.u32 4294901760, %v3908_v1  ;;  %v4507_v25 = vand.u32 4294901760, %v3923_v54 }
  0x86   : > { %1083 = vmatmul.mubr.f32.gmra.mrb[10].mxu0 %v3547_v13  ;;  %v3997_v27 = vsub.f32 %v259_v2, %v1230_v7  ;;  %v1239_v30 = vand.u32 4294901760, %v262_v43  ;;  %v4003_v56 = vld [vmem:[%s4336_s1 + $0x1f0] sm:$0xff]  ;;  %v4005_v48 = vpack.c.bf16 %v1492_v33, %v1485_v18  ;;  %v4007_v40 = vsub.f32 %v260_v59, %v1233_v6 }
  0x87   : > { %2884 = vmatpush3.bf16.msra.mxu0 %v3782_v11  ;;  %1300 = vmatprep.mubr.f32.mxu0 %v1299_v44  ;;  %v1498_v57 = vsub.f32 %v3908_v1, %v4506_v19  ;;  %v1505_v39 = vsub.f32 %v3923_v54, %v4507_v25  ;;  %v1236_v44 = vand.u32 4294901760, %v261_v53  ;;  %v4018_v7 = vpack.c.bf16 %v1287_v5, %v1284_v4  ;;  %v211_v33 = vld [vmem:[%s3442_s5 + $0x10] sm:$0xff] }
  0x88   : > { %2876 = vmatpush3.bf16.msra.mxu1 %v4477_v15  ;;  %2886 = vmatprep.subr.bf16.mxu0 %v3805_v0  ;;  %4508 = vst [vmem:[#allocation16_spill] sm:$0xff] %v4007_v40  ;;  %v4020_v18 = vsub.f32 %v277_v26, %v1284_v4  ;;  %v4022_v59 = vsub.f32 %v278_v9, %v1287_v5  ;;  %v4421_v6 = vand.u32 4294901760, %v3975_v16  ;;  %v216_v15 = vld [vmem:[%s3442_s5 + $0x38] sm:$0xff]  ;;  %v4045_v5 = vld [vmem:[%s4336_s1 + $0x170] sm:$0xff] }
  0x89   : > { %2910 = vmatprep.subr.bf16.mxu1 %v3836_v62  ;;  %v4013_v62 = vld [vmem:[%s4336_s1 + $0x1f8] sm:$0xff]  ;;  %v4028_v25 = vpack.c.bf16 %v1380_v20, %v1373_v50  ;;  %v1499_v2 = vand.u32 4294901760, %v1498_v57  ;;  %v1506_v19 = vand.u32 4294901760, %v1505_v39  ;;  %v4034_v26 = vpack.c.bf16 %v1239_v30, %v1236_v44 }
  0x8a   : > { %4509 = vst [vmem:[#allocation17_spill] sm:$0xff] %v4020_v18  ;;  %v4036_v9 = vsub.f32 %v261_v53, %v1236_v44  ;;  %v1293_v4 = vand.u32 4294901760, %v4013_v62  ;;  %v4052_v50 = vsub.f32 %v262_v43, %v1239_v30  ;;  %v4511_v53 = vand.u32 4294901760, %v3968_v8 }
  0x8b   : > { %1187 = vmatmul.mubr.f32.vlgmr.msra.gmra.mrb[8].mxu1 %v3483_v24  ;;  %2888 = vmatpush3.bf16.msra.mxu0 %v3821_v22  ;;  %v1290_v24 = vand.u32 4294901760, %v4003_v56  ;;  %v4512_v57 = vand.u32 4294901760, %v3970_v31  ;;  %v4060_v44 = vand.u32 4294901760, %v211_v33  ;;  %v4514_v43 = vand.u32 4294901760, %v4007_v40 }
  0x8c   : > { %2912 = vmatpush3.bf16.msra.mxu1 %v3858_v52  ;;  %1192 = vmatprep.mubr.f32.mxu1 %v3537_v61  ;;  %v4510_v52 = vand.u32 4294901760, %v3965_v29  ;;  %v1393_v20 = vsub.f32 %v3968_v8, %v4511_v53  ;;  %v215_v53 = vld [vmem:[%s3442_s5 + $0x30] sm:$0xff]  ;;  %v4081_v30 = vsub.f32 %v4013_v62, %v1293_v4  ;;  %s2225_s5 = sshll.u32 %s4576_s7, 3 }
  0x8d   : > { %2890 = vmatprep.subr.bf16.mxu0 %v3846_v21  ;;  %2914 = vmatprep.subr.bf16.mxu1 %v3895_v23  ;;  %v4050_v23 = vld [vmem:[%s4336_s1 + $0x178] sm:$0xff]  ;;  %v1512_v39 = vsub.f32 %v3970_v31, %v4512_v57  ;;  %v4069_v21 = vand.u32 4294901760, %v216_v15  ;;  %v2925_v57 = vpack.c.bf16 %v1506_v19, %v1499_v2  ;;  %s198_s30 = scalar_lea.vmem %s4337_s2, %s2225_s5 }
  0x8e   : > { %v1386_v61 = vsub.f32 %v3965_v29, %v4510_v52  ;;  %v1519_v52 = vsub.f32 %v3975_v16, %v4421_v6  ;;  %v1245_v22 = vand.u32 4294901760, %v4050_v23  ;;  %v1394_v19 = vand.u32 4294901760, %v1393_v20 }
  0x8f   : > { %1194 = vmatmul.mubr.f32.gmra.mrb[10].mxu1 %v3547_v13  ;;  %2892 = vmatpush3.bf16.msra.mxu0 %v3876_v3  ;;  %v4075_v13 = vsub.f32 %v4003_v56, %v1290_v24  ;;  %v1242_v3 = vand.u32 4294901760, %v4045_v5  ;;  %v1513_v2 = vand.u32 4294901760, %v1512_v39  ;;  %v4087_v56 = vsub.f32 %v211_v33, %v4060_v44 }
  0x90   : > { %2916 = vmatpush3.bf16.msra.mxu1 %v3921_v36  ;;  %2894 = vmatprep.subr.bf16.mxu0 %v3906_v28  ;;  %v1387_v6 = vand.u32 4294901760, %v1386_v61  ;;  %v4089_v28 = vand.u32 4294901760, %v215_v53  ;;  %v4513_v61 = vand.u32 4294901760, %v3997_v27  ;;  %v1407_v36 = vsub.f32 %v4007_v40, %v4514_v43 }
  0x91   : > { %2918 = vmatprep.subr.bf16.mxu1 %v3962_v55  ;;  %1551 = vmatprep.mubr.f32.mxu1 %v3807_v60  ;;  %v1520_v55 = vand.u32 4294901760, %v1519_v52  ;;  %v4099_v60 = vsub.f32 %v216_v15, %v4069_v21  ;;  %v4104_v33 = vsub.f32 %v4045_v5, %v1242_v3  ;;  %v4107_v20 = vsub.f32 %v4050_v23, %v1245_v22 }
  0x92   : > { %v1400_v62 = vsub.f32 %v3997_v27, %v4513_v61  ;;  %v4515_v43 = vand.u32 4294901760, %v4020_v18  ;;  %v4435_v5 = vand.u32 4294901760, %v4075_v13  ;;  %v2927_v23 = vpack.c.bf16 %v1394_v19, %v1387_v6 }
  0x93   : > { %2896 = vmatpush3.bf16.msra.mxu0 %v3934_v10  ;;  %v4120_v10 = vpack.c.bf16 %v1293_v4, %v1290_v24  ;;  %v4436_v39 = vand.u32 4294901760, %v4087_v56  ;;  %v4124_v52 = vsub.f32 %v215_v53, %v4089_v28  ;;  %v4437_v40 = vand.u32 4294901760, %v4099_v60 }
  0x94   : > { %2920 = vmatpush3.bf16.msra.mxu1 %v3984_v37  ;;  %2898 = vmatprep.subr.bf16.mxu0 %v3973_v63  ;;  %v1526_v15 = vsub.f32 %v4020_v18, %v4515_v43  ;;  %v4516_v37 = vand.u32 4294901760, %v4022_v59  ;;  %v4434_v63 = vand.u32 4294901760, %v4081_v30  ;;  %v1401_v43 = vand.u32 4294901760, %v1400_v62 }
  0x95   : > { %2922 = vmatprep.subr.bf16.mxu1 %v4005_v48  ;;  %v2929_v48 = vpack.c.bf16 %v1520_v55, %v1513_v2  ;;  %v1408_v18 = vand.u32 4294901760, %v1407_v36  ;;  %v4517_v6 = vand.u32 4294901760, %v4036_v9  ;;  %v4518_v4 = vand.u32 4294901760, %v4052_v50 }
  0x96   : > { %v1533_v61 = vsub.f32 %v4022_v59, %v4516_v37  ;;  %v4438_v19 = vand.u32 4294901760, %v4104_v33  ;;  %v4439_v2 = vand.u32 4294901760, %v4107_v20  ;;  %v1527_v36 = vand.u32 4294901760, %v1526_v15 }
  0x97   : > { %2900 = vmatpush3.bf16.msra.mxu0 %v3986_v49  ;;  %v1414_v24 = vsub.f32 %v4036_v9, %v4517_v6  ;;  %v1421_v53 = vsub.f32 %v4052_v50, %v4518_v4  ;;  %v1547_v62 = vsub.f32 %v4081_v30, %v4434_v63  ;;  %v1304_v37 = vsub.f32 %v4087_v56, %v4436_v39 }
  0x98   : > { %2924 = vmatpush3.bf16.msra.mxu1 %v4028_v25  ;;  %2902 = vmatprep.subr.bf16.mxu0 %v4018_v7  ;;  %v1534_v55 = vand.u32 4294901760, %v1533_v61  ;;  %v1540_v25 = vsub.f32 %v4075_v13, %v4435_v5  ;;  %v4149_v4 = vpack.c.bf16 %v1245_v22, %v1242_v3  ;;  %v2941_v15 = vpack.c.bf16 %v3679_v47, %v3677_v32 }
  0x99   : > { %2926 = vmatprep.subr.bf16.mxu1 %v2925_v57  ;;  %v2931_v57 = vpack.c.bf16 %v1408_v18, %v1401_v43  ;;  %v1313_v61 = vsub.f32 %v4099_v60, %v4437_v40  ;;  %v1415_v63 = vand.u32 4294901760, %v1414_v24  ;;  %v1422_v5 = vand.u32 4294901760, %v1421_v53 }
  0x9a   : > { %v1428_v39 = vsub.f32 %v4104_v33, %v4438_v19  ;;  %v1435_v22 = vsub.f32 %v4107_v20, %v4439_v2  ;;  %v2933_v3 = vpack.c.bf16 %v1534_v55, %v1527_v36  ;;  %v1541_v18 = vand.u32 4294901760, %v1540_v25 }
  0x9b   : > { %2904 = vmatpush3.bf16.msra.mxu0 %v4034_v26  ;;  %v1548_v43 = vand.u32 4294901760, %v1547_v62  ;;  %v1305_v6 = vand.u32 4294901760, %v1304_v37  ;;  %v4519_v40 = vand.u32 4294901760, %v4124_v52  ;;  %v2943_v24 = vpack.c.bf16 %v3692_v17, %v3690_v41 }
  0x9c   : > { %2928 = vmatpush3.bf16.msra.mxu1 %v2927_v23  ;;  %2906 = vmatprep.subr.bf16.mxu0 %v4120_v10  ;;  %v1314_v53 = vand.u32 4294901760, %v1313_v61  ;;  %v2935_v19 = vpack.c.bf16 %v1422_v5, %v1415_v63  ;;  %v1429_v36 = vand.u32 4294901760, %v1428_v39  ;;  %v1436_v55 = vand.u32 4294901760, %v1435_v22  ;;  %v4520_v5 = vld [vmem:[#allocation6_spill] sm:$0xff]  ;;  %v4524_v22 = vld [vmem:[#allocation3_spill] sm:$0xff] }
  0x9d   : > { %2930 = vmatprep.subr.bf16.mxu1 %v2929_v48  ;;  %v1319_v23 = vsub.f32 %v4124_v52, %v4519_v40  ;;  %v2945_v48 = vpack.c.bf16 %v3758_v51, %v3756_v46  ;;  %v2937_v25 = vpack.c.bf16 %v1548_v43, %v1541_v18  ;;  %v2947_v40 = vpack.c.bf16 %v3786_v34, %v3784_v38  ;;  %v4525_v18 = vld [vmem:[#allocation4_spill] sm:$0xff] }
  0x9e   : > { %v2939_v37 = vpack.c.bf16 %v1436_v55, %v1429_v36  ;;  %v2949_v63 = vpack.c.bf16 %v3810_v14, %v3800_v42  ;;  %v2951_v39 = vpack.c.bf16 %v3825_v58, %v3823_v45  ;;  %v2959_v43 = vpack.c.bf16 %v3968_v8, %v3965_v29  ;;  %v4528_v36 = vld [vmem:[#allocation10_spill] sm:$0xff]  ;;  %v4529_v55 = vld [vmem:[#allocation17_spill] sm:$0xff] }
  0x9f   : > { %2908 = vmatpush3.bf16.msra.mxu0 %v4149_v4  ;;  %v1320_v62 = vand.u32 4294901760, %v1319_v23  ;;  %v2961_v23 = vpack.c.bf16 %v3975_v16, %v3970_v31 }
  0xa0   : > { %2932 = vmatpush3.bf16.msra.mxu1 %v2931_v57  ;;  %2942 = vmatprep.subr.bf16.mxu0 %v2941_v15  ;;  %v4522_v57 = vld [vmem:[#allocation11_spill] sm:$0xff]  ;;  %v4523_v15 = vld [vmem:[#allocation12_spill] sm:$0xff] }
  0xa1   : > { %2934 = vmatprep.subr.bf16.mxu1 %v2933_v3  ;;  %v2955_v61 = vpack.c.bf16 %v4523_v15, %v4522_v57  ;;  %v2957_v3 = vpack.c.bf16 %v3923_v54, %v3908_v1 }
  0xa2   : > { %1306 = vmatmul.mubr.f32.vlgmr.msra.gmra.mrb[12].mxu0 %v1305_v6  ;;  %v4521_v6 = vld [vmem:[#allocation9_spill] sm:$0xff] }
  0xa3   : > { %2944 = vmatpush3.bf16.msra.mxu0 %v2943_v24  ;;  %1315 = vmatprep.mubr.f32.mxu0 %v1314_v53  ;;  %v4526_v24 = vand.u32 4294901760, %v3842_v12  ;;  %v4527_v53 = vld [vmem:[#allocation16_spill] sm:$0xff] }
  0xa4   : > { %2936 = vmatpush3.bf16.msra.mxu1 %v2935_v19  ;;  %2946 = vmatprep.subr.bf16.mxu0 %v2945_v48  ;;  %v2953_v19 = vpack.c.bf16 %v4521_v6, %v4520_v5  ;;  %v2963_v48 = vpack.c.bf16 %v4527_v53, %v3997_v27 }
  0xa5   : > { %2938 = vmatprep.subr.bf16.mxu1 %v2937_v25  ;;  %v2965_v25 = vpack.c.bf16 %v4022_v59, %v4529_v55 }
  0xa6   : > { %1321 = vmatmul.mubr.f32.gmra.mrb[14].mxu0 %v1320_v62  ;;  %v4530_v62 = vld [vmem:[#allocation7_spill] sm:$0xff] }
  0xa7   : > { %2948 = vmatpush3.bf16.msra.mxu0 %v2947_v40  ;;  %1695 = vmatprep.mubr.f32.mxu0 %v3842_v12  ;;  %v2967_v40 = vpack.c.bf16 %v4052_v50, %v4036_v9  ;;  %v2969_v12 = vpack.c.bf16 %v4081_v30, %v4075_v13 }
  0xa8   : > { %2940 = vmatpush3.bf16.msra.mxu1 %v2939_v37  ;;  %2950 = vmatprep.subr.bf16.mxu0 %v2949_v63  ;;  %v4531_v37 = vld [vmem:[#allocation8_spill] sm:$0xff]  ;;  %v4532_v63 = vld [vmem:[#allocation13_spill] sm:$0xff] }
  0xa9   : > { %2974 = vmatprep.subr.bf16.mxu1 %v3750_v35 }
  0xab   : > { %1553 = vmatmul.mubr.f32.vlgmr.msra.gmra.mrb[12].mxu1 %v4060_v44  ;;  %2952 = vmatpush3.bf16.msra.mxu0 %v2951_v39  ;;  %v2971_v39 = vpack.c.bf16 %v4107_v20, %v4104_v33 }
  0xac   : > { %2976 = vmatpush3.bf16.msra.mxu1 %v4524_v22  ;;  %1558 = vmatprep.mubr.f32.mxu1 %v4069_v21 }
  0xad   : > { %2954 = vmatprep.subr.bf16.mxu0 %v2953_v19  ;;  %2978 = vmatprep.subr.bf16.mxu1 %v4525_v18  ;;  %v4533_v19 = vld [vmem:[#allocation14_spill] sm:$0xff] }
  0xaf   : > { %1560 = vmatmul.mubr.f32.gmra.mrb[14].mxu1 %v4089_v28  ;;  %2956 = vmatpush3.bf16.msra.mxu0 %v2955_v61  ;;  %v4534_v61 = vand.u32 4294901760, %v3677_v32  ;;  %v4541_v32 = vand.u32 4294901760, %v3784_v38  ;;  %v4546_v38 = vand.u32 4294901760, %v3825_v58  ;;  %v4552_v58 = vand.u32 4294901760, %v4523_v15 }
  0xb0   : > { %2980 = vmatpush3.bf16.msra.mxu1 %v3782_v11  ;;  %2958 = vmatprep.subr.bf16.mxu0 %v2957_v3  ;;  %v4535_v3 = vand.u32 4294901760, %v3679_v47  ;;  %v4542_v47 = vand.u32 4294901760, %v3786_v34  ;;  %v4547_v34 = vld [vmem:[#allocation5_spill] sm:$0xff]  ;;  %v4558_v15 = vand.u32 4294901760, %v3968_v8 }
  0xb1   : > { %2982 = vmatprep.subr.bf16.mxu1 %v3805_v0  ;;  %1811 = vmatprep.mubr.f32.mxu1 %v4526_v24  ;;  %v4537_v24 = vand.u32 4294901760, %v3690_v41 }
  0xb2   : > { %v3011_v41 = vpack.c.bf16 %v4542_v47, %v4541_v32  ;;  %v3118_v32 = vmov 0.0  }
  0xb3   : > { %2960 = vmatpush3.bf16.msra.mxu0 %v2959_v43  ;;  %v3005_v43 = vpack.c.bf16 %v4535_v3, %v4534_v61  ;;  %v4550_v3 = vand.u32 4294901760, %v4087_v56  ;;  %205 = vst.msk [vmem:[#allocation2] sm:$0xff] %vm204_vm0, %v3118_v32  ;;  %206 = vst.msk [vmem:[#allocation2 + $0x8] sm:$0xff] %vm204_vm0, %v3118_v32 }
  0xb4   : > { %2984 = vmatpush3.bf16.msra.mxu1 %v4528_v36  ;;  %2962 = vmatprep.subr.bf16.mxu0 %v2961_v23  ;;  %v4536_v23 = vld [vmem:[#allocation15_spill] sm:$0xff] }
  0xb5   : > { %2986 = vmatprep.subr.bf16.mxu1 %v4530_v62 }
  0xb7   : > { %2964 = vmatpush3.bf16.msra.mxu0 %v2963_v48  ;;  %v4538_v48 = vand.u32 4294901760, %v3692_v17  ;;  %v4543_v17 = vand.u32 4294901760, %v3800_v42  ;;  %v4548_v42 = vand.u32 4294901760, %v4520_v5  ;;  %v4555_v5 = vand.u32 4294901760, %v3923_v54 }
  0xb8   : > { %2988 = vmatpush3.bf16.msra.mxu1 %v4531_v37  ;;  %2966 = vmatprep.subr.bf16.mxu0 %v2965_v25 }
  0xb9   : > { %2990 = vmatprep.subr.bf16.mxu1 %v4532_v63  ;;  %v3007_v25 = vpack.c.bf16 %v4538_v48, %v4537_v24  ;;  %v4553_v24 = vand.u32 4294901760, %v4099_v60 }
  0xbb   : > { %2968 = vmatpush3.bf16.msra.mxu0 %v2967_v40  ;;  %v4539_v40 = vand.u32 4294901760, %v3756_v46  ;;  %v4544_v46 = vand.u32 4294901760, %v3810_v14  ;;  %v4549_v14 = vand.u32 4294901760, %v4521_v6 }
  0xbc   : > { %2992 = vmatpush3.bf16.msra.mxu1 %v4533_v19  ;;  %2970 = vmatprep.subr.bf16.mxu0 %v2969_v12  ;;  %v4540_v12 = vand.u32 4294901760, %v3758_v51 }
  0xbd   : > { %2994 = vmatprep.subr.bf16.mxu1 %v4536_v23  ;;  %v3013_v51 = vpack.c.bf16 %v4544_v46, %v4543_v17 }
  0xbe   : > { %v3009_v2 = vpack.c.bf16 %v4540_v12, %v4539_v40 }
  0xbf   : > { %2972 = vmatpush3.bf16.msra.mxu0 %v2971_v39  ;;  %v4545_v39 = vand.u32 4294901760, %v3823_v45  ;;  %v4551_v45 = vand.u32 4294901760, %v4522_v57  ;;  %v4557_v57 = vand.u32 4294901760, %v3965_v29  ;;  %v4562_v29 = vand.u32 4294901760, %v4527_v53 }
  0xc0   : > { %2996 = vmatpush3.bf16.msra.mxu1 %v3986_v49  ;;  %3006 = vmatprep.subr.bf16.mxu0 %v3005_v43  ;;  %v4568_v53 = vand.u32 4294901760, %v4081_v30 }
  0xc1   : > { %2998 = vmatprep.subr.bf16.mxu1 %v4018_v7  ;;  %v3015_v61 = vpack.c.bf16 %v4546_v38, %v4545_v39  ;;  %v3019_v43 = vpack.c.bf16 %v4552_v58, %v4551_v45 }
  0xc2   : > { %1698 = vmatmul.mubr.f32.vlgmr.msra.gmra.mrb[16].mxu0 %v4087_v56  ;;  %v4556_v56 = vand.u32 4294901760, %v4124_v52 }
  0xc3   : > { %3008 = vmatpush3.bf16.msra.mxu0 %v3007_v25  ;;  %1704 = vmatprep.mubr.f32.mxu0 %v4099_v60  ;;  %v4559_v60 = vand.u32 4294901760, %v3970_v31  ;;  %v4564_v31 = vand.u32 4294901760, %v4022_v59  ;;  %v4569_v59 = vand.u32 4294901760, %v4104_v33 }
  0xc4   : > { %3000 = vmatpush3.bf16.msra.mxu1 %v4034_v26  ;;  %3010 = vmatprep.subr.bf16.mxu0 %v3009_v2  ;;  %v3017_v2 = vpack.c.bf16 %v4549_v14, %v4548_v42 }
  0xc5   : > { %3002 = vmatprep.subr.bf16.mxu1 %v4120_v10 }
  0xc6   : > { %1707 = vmatmul.mubr.f32.gmra.mrb[18].mxu0 %v4124_v52  ;;  %v4561_v52 = vand.u32 4294901760, %v3997_v27  ;;  %v4567_v27 = vand.u32 4294901760, %v4075_v13 }
  0xc7   : > { %3012 = vmatpush3.bf16.msra.mxu0 %v3011_v41  ;;  %1992 = vmatprep.mubr.f32.mxu0 %v4547_v34 }
  0xc8   : > { %3004 = vmatpush3.bf16.msra.mxu1 %v4149_v4  ;;  %3014 = vmatprep.subr.bf16.mxu0 %v3013_v51 }
  0xc9   : > { %3038 = vmatprep.subr.bf16.mxu1 %v3750_v35  ;;  %v4554_v35 = vand.u32 4294901760, %v3908_v1  ;;  %v4560_v1 = vand.u32 4294901760, %v3975_v16  ;;  %v4566_v16 = vand.u32 4294901760, %v4052_v50 }
  0xcb   : > { %1815 = vmatmul.mubr.f32.vlgmr.msra.gmra.mrb[16].mxu1 %v4550_v3  ;;  %3016 = vmatpush3.bf16.msra.mxu0 %v3015_v61  ;;  %v3021_v6 = vpack.c.bf16 %v4555_v5, %v4554_v35  ;;  %v3025_v54 = vpack.c.bf16 %v4560_v1, %v4559_v60 }
  0xcc   : > { %3040 = vmatpush3.bf16.msra.mxu1 %v4524_v22  ;;  %1822 = vmatprep.mubr.f32.mxu1 %v4553_v24  ;;  %v3023_v22 = vpack.c.bf16 %v4558_v15, %v4557_v57 }
  0xcd   : > { %3018 = vmatprep.subr.bf16.mxu0 %v3017_v2  ;;  %3042 = vmatprep.subr.bf16.mxu1 %v4525_v18  ;;  %v3027_v18 = vpack.c.bf16 %v4562_v29, %v4561_v52 }
  0xcf   : > { %1826 = vmatmul.mubr.f32.gmra.mrb[18].mxu1 %v4556_v56  ;;  %3020 = vmatpush3.bf16.msra.mxu0 %v3019_v43 }
  0xd0   : > { %3044 = vmatpush3.bf16.msra.mxu1 %v3782_v11  ;;  %3022 = vmatprep.subr.bf16.mxu0 %v3021_v6  ;;  %v4563_v11 = vand.u32 4294901760, %v4529_v55  ;;  %v4570_v55 = vand.u32 4294901760, %v4107_v20 }
  0xd1   : > { %3046 = vmatprep.subr.bf16.mxu1 %v3805_v0  ;;  %2103 = vmatprep.mubr.f32.mxu1 %v4547_v34  ;;  %v4565_v0 = vand.u32 4294901760, %v4036_v9 }
  0xd2   : > { %v3029_v8 = vpack.c.bf16 %v4564_v31, %v4563_v11 }
  0xd3   : > { %3024 = vmatpush3.bf16.msra.mxu0 %v3023_v22  ;;  %v3031_v48 = vpack.c.bf16 %v4566_v16, %v4565_v0 }
  0xd4   : > { %3048 = vmatpush3.bf16.msra.mxu1 %v4528_v36  ;;  %3026 = vmatprep.subr.bf16.mxu0 %v3025_v54  ;;  %v3033_v36 = vpack.c.bf16 %v4568_v53, %v4567_v27 }
  0xd5   : > { %3050 = vmatprep.subr.bf16.mxu1 %v4530_v62  ;;  %v3035_v62 = vpack.c.bf16 %v4570_v55, %v4569_v59 }
  0xd7   : > { %3028 = vmatpush3.bf16.msra.mxu0 %v3027_v18 }
  0xd8   : > { %3052 = vmatpush3.bf16.msra.mxu1 %v4531_v37  ;;  %3030 = vmatprep.subr.bf16.mxu0 %v3029_v8 }
  0xd9   : > { %3054 = vmatprep.subr.bf16.mxu1 %v4532_v63 }
  0xdb   : > { %3032 = vmatpush3.bf16.msra.mxu0 %v3031_v48 }
  0xdc   : > { %3056 = vmatpush3.bf16.msra.mxu1 %v4533_v19  ;;  %3034 = vmatprep.subr.bf16.mxu0 %v3033_v36 }
  0xdd   : > { %3058 = vmatprep.subr.bf16.mxu1 %v4536_v23 }
  0xdf   : > { %3036 = vmatpush3.bf16.msra.mxu0 %v3035_v62 }
  0xe0   : > { %3060 = vmatpush3.bf16.msra.mxu1 %v3986_v49 }
  0xe1   : > { %3062 = vmatprep.subr.bf16.mxu1 %v4018_v7 }
  0xe2   : > { %1994 = vmatmul.mubr.f32.vlgmr.msra.gmra.mrb[20].mxu0 %v4060_v44 }
  0xe3   : > { %1999 = vmatprep.mubr.f32.mxu0 %v4069_v21 }
  0xe4   : > { %3064 = vmatpush3.bf16.msra.mxu1 %v4034_v26 }
  0xe5   : > { %3066 = vmatprep.subr.bf16.mxu1 %v4120_v10 }
  0xe6   : > { %2001 = vmatmul.mubr.f32.gmra.mrb[22].mxu0 %v4089_v28 }
  0xe8   : > { %3068 = vmatpush3.bf16.msra.mxu1 %v4149_v4 }
  0xeb   : > { %2105 = vmatmul.mubr.f32.vlgmr.msra.gmra.mrb[20].mxu1 %v4060_v44 }
  0xec   : > { %2110 = vmatprep.mubr.f32.mxu1 %v4069_v21 }
  0xef   : > { %2112 = vmatmul.mubr.f32.gmra.mrb[22].mxu1 %v4089_v28 }
 0x115   : > { %v2261_v49 = vpop.f32.mrb[0].mxu0 }
 0x116   : > { %v2262_v7 = vpop.f32.mrb[1].mxu0 }
 0x117   : > { %v2263_v9 = vadd.f32 %v2262_v7, %v2261_v49 }
 0x11e   : > { %v2299_v50 = vpop.f32.mrb[0].mxu1 }
 0x11f   : > { %v2300_v30 = vpop.f32.mrb[1].mxu1 }
 0x120   : > { %v2301_v13 = vadd.f32 %v2300_v30, %v2299_v50 }
 0x122   : > { %v637_v33 = vadd.f32 %v2301_v13, %v2263_v9  ;;  %v2302_v26 = vpop.f32.mrb[2].mxu1 }
 0x123   : > { %v2303_v20 = vpop.f32.mrb[3].mxu1 }
 0x124   : > { %v2264_v10 = vpop.f32.mrb[2].mxu0  ;;  %v2304_v37 = vadd.f32 %v2303_v20, %v2302_v26 }
 0x125   : > { %v2265_v63 = vpop.f32.mrb[3].mxu0 }
 0x126   : > { %v2266_v19 = vadd.f32 %v2265_v63, %v2264_v10 }
 0x128   : > { %v644_v4 = vadd.f32 %v2304_v37, %v2266_v19 }
 0x135   : > { %v2337_v23 = vpop.f32.mrb[4].mxu0 }
 0x136   : > { %v2338_v44 = vpop.f32.mrb[5].mxu0 }
 0x137   : > { %v2339_v25 = vadd.f32 %v2338_v44, %v2337_v23 }
 0x139   : > { %v782_v21 = vadd.f32 %v2339_v25, %v637_v33  ;;  %v2340_v40 = vpop.f32.mrb[6].mxu0 }
 0x13a   : > { %v2341_v28 = vpop.f32.mrb[7].mxu0 }
 0x13b   : > { %v2342_v12 = vadd.f32 %v2341_v28, %v2340_v40 }
 0x13d   : > { %v791_v47 = vadd.f32 %v2342_v12, %v644_v4 }
 0x13e   : > { %v2375_v41 = vpop.f32.mrb[4].mxu1 }
 0x13f   : > { %v2376_v17 = vpop.f32.mrb[5].mxu1 }
 0x140   : > { %v2377_v46 = vadd.f32 %v2376_v17, %v2375_v41 }
 0x142   : > { %v899_v51 = vadd.f32 %v2377_v46, %v782_v21  ;;  %v2378_v39 = vpop.f32.mrb[6].mxu1 }
 0x143   : > { %v2379_v38 = vpop.f32.mrb[7].mxu1 }
 0x144   : > { %v2380_v61 = vadd.f32 %v2379_v38, %v2378_v39 }
 0x146   : > { %v910_v34 = vadd.f32 %v2380_v61, %v791_v47 }
 0x155   : > { %v2413_v42 = vpop.f32.mrb[8].mxu0 }
 0x156   : > { %v2414_v14 = vpop.f32.mrb[9].mxu0 }
 0x157   : > { %v2415_v2 = vadd.f32 %v2414_v14, %v2413_v42  ;;  %v208_v14 = vld [vmem:[#allocation2 + $0x8] sm:$0xff] }
 0x159   : > { %v1078_v3 = vadd.f32 %v2415_v2, %v899_v51  ;;  %v2416_v45 = vpop.f32.mrb[10].mxu0  ;;  %v207_v51 = vld [vmem:[#allocation2] sm:$0xff] }
 0x15a   : > { %v2417_v58 = vpop.f32.mrb[11].mxu0 }
 0x15b   : > { %v2418_v43 = vadd.f32 %v2417_v58, %v2416_v45 }
 0x15d   : > { %v1085_v24 = vadd.f32 %v2418_v43, %v910_v34 }
 0x15e   : > { %v2451_v35 = vpop.f32.mrb[8].mxu1 }
 0x15f   : > { %v2452_v5 = vpop.f32.mrb[9].mxu1 }
 0x160   : > { %v2453_v6 = vadd.f32 %v2452_v5, %v2451_v35 }
 0x162   : > { %v1189_v56 = vadd.f32 %v2453_v6, %v1078_v3  ;;  %v2454_v57 = vpop.f32.mrb[10].mxu1 }
 0x163   : > { %v2455_v15 = vpop.f32.mrb[11].mxu1 }
 0x164   : > { %v2456_v22 = vadd.f32 %v2455_v15, %v2454_v57 }
 0x166   : > { %v1196_v60 = vadd.f32 %v2456_v22, %v1085_v24 }
 0x175   : > { %v2489_v1 = vpop.f32.mrb[12].mxu0 }
 0x176   : > { %v2490_v54 = vpop.f32.mrb[13].mxu0 }
 0x177   : > { %v2491_v52 = vadd.f32 %v2490_v54, %v2489_v1 }
 0x179   : > { %v1308_v29 = vadd.f32 %v2491_v52, %v1189_v56  ;;  %v2492_v18 = vpop.f32.mrb[14].mxu0 }
 0x17a   : > { %v2493_v11 = vpop.f32.mrb[15].mxu0 }
 0x17b   : > { %v2494_v31 = vadd.f32 %v2493_v11, %v2492_v18 }
 0x17d   : > { %v1323_v8 = vadd.f32 %v2494_v31, %v1196_v60 }
 0x17e   : > { %v2527_v0 = vpop.f32.mrb[12].mxu1 }
 0x17f   : > { %v2528_v16 = vpop.f32.mrb[13].mxu1 }
 0x180   : > { %v2529_v48 = vadd.f32 %v2528_v16, %v2527_v0 }
 0x182   : > { %v1555_v27 = vadd.f32 %v2529_v48, %v1308_v29  ;;  %v2530_v53 = vpop.f32.mrb[14].mxu1 }
 0x183   : > { %v2531_v36 = vpop.f32.mrb[15].mxu1 }
 0x184   : > { %v2532_v59 = vadd.f32 %v2531_v36, %v2530_v53 }
 0x186   : > { %v1562_v55 = vadd.f32 %v2532_v59, %v1323_v8 }
 0x195   : > { %v2565_v62 = vpop.f32.mrb[16].mxu0 }
 0x196   : > { %v2566_v49 = vpop.f32.mrb[17].mxu0 }
 0x197   : > { %v2567_v7 = vadd.f32 %v2566_v49, %v2565_v62 }
 0x199   : > { %v1700_v9 = vadd.f32 %v2567_v7, %v1555_v27  ;;  %v2568_v50 = vpop.f32.mrb[18].mxu0 }
 0x19a   : > { %v2569_v30 = vpop.f32.mrb[19].mxu0 }
 0x19b   : > { %v2570_v13 = vadd.f32 %v2569_v30, %v2568_v50 }
 0x19d   : > { %v1709_v33 = vadd.f32 %v2570_v13, %v1562_v55 }
 0x19e   : > { %v2603_v26 = vpop.f32.mrb[16].mxu1 }
 0x19f   : > { %v2604_v20 = vpop.f32.mrb[17].mxu1 }
 0x1a0   : > { %v2605_v10 = vadd.f32 %v2604_v20, %v2603_v26 }
 0x1a2   : > { %v1817_v37 = vadd.f32 %v2605_v10, %v1700_v9  ;;  %v2606_v63 = vpop.f32.mrb[18].mxu1 }
 0x1a3   : > { %v2607_v19 = vpop.f32.mrb[19].mxu1 }
 0x1a4   : > { %v2608_v4 = vadd.f32 %v2607_v19, %v2606_v63 }
 0x1a6   : > { %v1828_v23 = vadd.f32 %v2608_v4, %v1709_v33 }
 0x1b5   : > { %v2641_v44 = vpop.f32.mrb[20].mxu0 }
 0x1b6   : > { %v2642_v25 = vpop.f32.mrb[21].mxu0 }
 0x1b7   : > { %v2643_v21 = vadd.f32 %v2642_v25, %v2641_v44 }
 0x1b9   : > { %v1996_v40 = vadd.f32 %v2643_v21, %v1817_v37  ;;  %v2644_v28 = vpop.f32.mrb[22].mxu0 }
 0x1ba   : > { %v2645_v12 = vpop.f32.mrb[23].mxu0 }
 0x1bb   : > { %v2646_v32 = vadd.f32 %v2645_v12, %v2644_v28 }
 0x1bd   : > { %v2003_v47 = vadd.f32 %v2646_v32, %v1828_v23 }
 0x1be   : > { %v2679_v41 = vpop.f32.mrb[20].mxu1 }
 0x1bf   : > { %v2680_v17 = vpop.f32.mrb[21].mxu1 }
 0x1c0   : > { %v2681_v46 = vadd.f32 %v2680_v17, %v2679_v41 }
 0x1c2   : > { %v2107_v39 = vadd.f32 %v2681_v46, %v1996_v40  ;;  %v2682_v38 = vpop.f32.mrb[22].mxu1 }
 0x1c3   : > { %v2683_v61 = vpop.f32.mrb[23].mxu1 }
 0x1c4   : > { %v2117_v34 = vadd.f32 %v2107_v39, %v207_v51  ;;  %v2684_v42 = vadd.f32 %v2683_v61, %v2682_v38 }
 0x1c6   : > { %2120 = vst.msk [vmem:[#allocation2] sm:$0xff] %vm204_vm0, %v2117_v34  ;;  %v2114_v2 = vadd.f32 %v2684_v42, %v2003_v47 }
 0x1c8   : > { %v2118_v3 = vadd.f32 %v2114_v2, %v208_v14 }
 0x1ca   : > { %2121 = vst.msk [vmem:[#allocation2 + $0x8] sm:$0xff] %vm204_vm0, %v2118_v3 }
 0x1cd   : > { %v2125_v45 = vld [vmem:[#allocation2] sm:$0xff] }
 0x1ce   : > { %2127 = vst.msk [vmem:[%s198_s30] sm:$0xff] %vm204_vm0, %v2125_v45 }
 0x1d1   : > { %v2126_v58 = vld [vmem:[#allocation2 + $0x8] sm:$0xff] }
 0x1d2   : > { %2128 = vst.msk [vmem:[%s198_s30 + $0x8] sm:$0xff] %vm204_vm0, %v2126_v58 }
 0x1d3 PF: > { %s12_s11 = sadd.s32 1, %s3116_s11   ;;  %s4571_s9 = smov %s3112_s10 }
 0x1d4   : > { %p9_p5 = scmp.ge.s32.totalorder %s12_s11, 4   ;;  %s4572_s10 = smov %s4574_s12 }
 0x1d6   :  { %11 = sbr.rel (!%p9_p5) target bundleno = 2 (0x2), region = 69 }

</bundles_post_ra>
